<compile_context>
chip_gen: v6e
topology: v6e:2x2x1
jax: 0.10.0
libtpu: 0.0.40
codegen_flags: <defaults>
</compile_context>

<pallas_src>
import functools
import math

import jax
import jax.numpy as jnp
from jax.experimental import pallas as pl
from jax.experimental.pallas import tpu as pltpu


# ----------------------------------------------------------------------------- 
# Flat (row-major H*W) roll helper.  flat_roll(a, k) == jnp.roll(a, k, axis=0).
# Prefer pltpu.roll (XLU rotate, keeps the tap shifts off the load/store slots);
# its direction/availability is pinned once by a tiny probe kernel.
# -----------------------------------------------------------------------------
_ROLL_MODE = None


def _resolve_roll_mode():
    """One-off capability/direction check for pltpu.roll (runs eagerly, cached)."""
    global _ROLL_MODE
    if _ROLL_MODE is not None:
        return _ROLL_MODE
    try:
        def probe(x_ref, o_ref):
            o_ref[...] = pltpu.roll(x_ref[...], 9, axis=0)

        x = jnp.arange(64 * 128, dtype=jnp.float32).reshape(64, 128)
        y = pl.pallas_call(
            probe, out_shape=jax.ShapeDtypeStruct((64, 128), jnp.float32))(x)
        if bool(jnp.array_equal(y, jnp.roll(x, 9, axis=0))):
            _ROLL_MODE = "xlu"
        elif bool(jnp.array_equal(y, jnp.roll(x, -9, axis=0))):
            _ROLL_MODE = "xlu_neg"
        else:
            _ROLL_MODE = "slice"
    except Exception:
        # XLU rotate not lowerable here -> safe slice+concat fallback.
        _ROLL_MODE = "slice"
    return _ROLL_MODE


def _make_flat_roll(mode, n):
    """Return flat_roll(a, k) == jnp.roll(a, k, axis=0) for static 0 <= k < n."""
    if mode == "xlu":
        return lambda a, k: pltpu.roll(a, k, axis=0)
    if mode == "xlu_neg":
        return lambda a, k: pltpu.roll(a, (n - k) % n, axis=0)

    def _slice_roll(a, k):
        if k % n == 0:
            return a
        return jnp.concatenate([a[n - k:, :], a[:n - k, :]], axis=0)

    return _slice_roll


def _padded_bytes(shape, dtype):
    """VMEM footprint of an array, padded to the (8,128)-style tile grid."""
    dt = jnp.dtype(dtype)
    pack = (4 // max(1, dt.itemsize)) * 8          # 8 rows f32, 16 rows bf16 per tile
    s = list(shape)
    s[-1] = pl.cdiv(s[-1], 128) * 128
    if len(s) >= 2:
        s[-2] = pl.cdiv(s[-2], pack) * pack
    return math.prod(s) * dt.itemsize


# -----------------------------------------------------------------------------
# Kernel
# -----------------------------------------------------------------------------
def bottleneck_se_kernel(x_ref, w1_ref, s1_ref, b1_ref,
                         w2_ref, s2_ref, b2_ref,
                         w3_ref, s3_ref, b3_ref,
                         wse1_ref, wse2_ref,
                         o_ref, *, H, W, flat_roll):
    HW = H * W
    f32 = jnp.float32
    bf16 = jnp.bfloat16

    xf = x_ref[0]                                              # (HW, Cin), native f32

    # ---- conv1 (1x1) + folded bn1 + relu ------------------------------------
    h1 = jnp.dot(xf, w1_ref[...], preferred_element_type=f32)
    h1 = jnp.maximum(h1 * s1_ref[...] + b1_ref[...], 0.0)     # (HW, Cw) f32

    # ---- conv2 (3x3, stride 1, pad 1) as ONE fused im2col matmul ------------
    # Border masks derived from an in-VMEM iota (no lane-padded (HW,1) HBM inputs).
    flat = jax.lax.broadcasted_iota(jnp.int32, (HW, 1), 0)
    col = flat % W
    ok_left = col <= (W - 2)     # input cols legitimately read by the ox=-1 taps
    ok_right = col >= 1          # input cols legitimately read by the ox=+1 taps
    ok_up = flat < (HW - W)      # input rows legitimately read by the oy=-1 taps
    ok_down = flat >= W          # input rows legitimately read by the oy=+1 taps

    # Mask-before-shift: 2 column-mask selects total (vs 6 per-tap multiplies).
    cL = jnp.where(ok_left, h1, 0.0)
    cR = jnp.where(ok_right, h1, 0.0)

    # flat_roll(a, k)[p] == a[(p - k) % HW]; tap(oy, ox)[p] must be h1[p + oy*W + ox]
    # (zero outside the image).  Column wrap is killed by the input column masks,
    # row wrap of the +-W rolls by the input row masks below.
    t_m1 = flat_roll(cL, 1)                                     # ox = -1
    t_p1 = flat_roll(cR, HW - 1)                                # ox = +1
    g_mid = jnp.concatenate([t_m1, h1, t_p1], axis=1)           # oy =  0 group (HW, 3Cw)
    g_top = flat_roll(jnp.where(ok_up, g_mid, 0.0), W)          # oy = -1 group
    g_bot = flat_roll(jnp.where(ok_down, g_mid, 0.0), HW - W)   # oy = +1 group

    # (HW, 9*Cw) bf16 im2col slab -> single K=9*Cw MXU pass (vs 9 thin K=Cw passes),
    # no per-tap accumulator adds; accumulation stays f32 on the MXU.
    slab = jnp.concatenate(
        [g_top.astype(bf16), g_mid.astype(bf16), g_bot.astype(bf16)], axis=1)
    h2 = jnp.dot(slab, w2_ref[...], preferred_element_type=f32)  # (HW, Cw)
    h2 = jnp.maximum(h2 * s2_ref[...] + b2_ref[...], 0.0)

    # ---- conv3 (1x1) + folded bn3 (bf16 operands, f32 accumulate) -----------
    h3 = jnp.dot(h2.astype(bf16), w3_ref[...], preferred_element_type=f32)
    h3 = h3 * s3_ref[...] + b3_ref[...]                          # (HW, Cout) f32

    # ---- SELayer: GAP -> fc1/relu -> fc2/sigmoid -> channel scale -----------
    # GAP as a single M=1 MXU pass with the 1/HW constant folded into the ones row.
    inv_hw_row = jnp.full((1, HW), 1.0 / HW, dtype=f32)
    pooled = jnp.dot(inv_hw_row, h3, preferred_element_type=f32)  # (1, Cout)
    se = jnp.maximum(jnp.dot(pooled, wse1_ref[...], preferred_element_type=f32), 0.0)
    se = jax.nn.sigmoid(jnp.dot(se, wse2_ref[...], preferred_element_type=f32))

    # ---- SE scale + identity residual + relu, one lane-dense store ----------
    o_ref[0] = jnp.maximum(h3 * se + xf, 0.0).astype(o_ref.dtype)


# -----------------------------------------------------------------------------
# Wrapper
# -----------------------------------------------------------------------------
def bottleneck_se(x_nhwc, w1, s1, b1, w2_hwio, s2, b2, w3, s3, b3, wse1, wse2):
    """x_nhwc: (N,H,W,Cin) channels-last.  w1:(Cin,Cw)  w2_hwio:(3,3,Cw,Cw)
    w3:(Cw,Cout)  wse1:(Cout,Cse)  wse2:(Cse,Cout)  s*/b*: folded BN (1,C)."""
    N, H, W, Cin = x_nhwc.shape
    Cw = w1.shape[1]
    Cout = w3.shape[1]
    HW = H * W
    assert Cin == Cout, "identity residual requires inplanes == planes*expansion"
    assert H >= 2 and W >= 2

    f32 = jnp.float32
    bf16 = jnp.bfloat16

    # conv2 weight in tap-major im2col layout, bf16 MXU operand (host-side, free).
    w2_flat = w2_hwio.reshape(9 * Cw, Cw).astype(bf16)
    w3_bf = w3.astype(bf16)

    # Contiguous-dim merge only: no transpose, no extra HBM pass.
    x_flat = x_nhwc.reshape(N, HW, Cin)

    # Pin pltpu.roll direction/availability (eager, cached across calls).
    flat_roll = _make_flat_roll(_resolve_roll_mode(), HW)
    kernel = functools.partial(bottleneck_se_kernel, H=H, W=W, flat_roll=flat_roll)

    weights = [w1, s1, b1, w2_flat, s2, b2, w3_bf, s3, b3, wse1, wse2]

    def rep(arr):
        nd = arr.ndim
        return pl.BlockSpec(arr.shape, lambda n, _nd=nd: (0,) * _nd)

    # --- VMEM budget: x/out blocks and replicated weights are double-buffered by the
    #     pipeline; add the kernel-internal f32/bf16 intermediates.  Never request the
    #     whole 64 MiB physical VMEM of a v7x TensorCore (cap at 48 MiB).
    need = 2 * (_padded_bytes((HW, Cin), x_nhwc.dtype)
                + _padded_bytes((HW, Cout), x_nhwc.dtype))
    need += 2 * sum(_padded_bytes(a.shape, a.dtype) for a in weights)
    need += 4 * _padded_bytes((HW, Cw), f32)          # h1 / cL / cR / conv2 output
    need += 3 * _padded_bytes((HW, 3 * Cw), f32)      # the three tap groups
    need += _padded_bytes((HW, 9 * Cw), bf16)         # im2col slab (matmul LHS)
    need += 2 * _padded_bytes((HW, Cout), f32)        # h3 + residual/relu temp
    vmem_limit = int(min(48 * 1024 * 1024, max(2 * need, 32 * 1024 * 1024)))

    out = pl.pallas_call(
        kernel,
        out_shape=jax.ShapeDtypeStruct((N, HW, Cout), x_nhwc.dtype),
        grid_spec=pltpu.PrefetchScalarGridSpec(
            num_scalar_prefetch=0,
            grid=(N,),
            in_specs=[pl.BlockSpec((1, HW, Cin), lambda n: (n, 0, 0))]
                     + [rep(a) for a in weights],
            out_specs=pl.BlockSpec((1, HW, Cout), lambda n: (n, 0, 0)),
        ),
        compiler_params=pltpu.CompilerParams(
            dimension_semantics=("parallel",),        # batch -> 2 TCs on v7x
            vmem_limit_bytes=vmem_limit,
        ),
    )(x_flat, *weights)

    return out.reshape(N, H, W, Cout)


# -----------------------------------------------------------------------------
# Pure-JAX reference (full f32, HIGHEST precision) matching the PyTorch forward.
# -----------------------------------------------------------------------------
def bottleneck_se_reference(x, w1, s1, b1, w2_hwio, s2, b2, w3, s3, b3, wse1, wse2):
    hp = jax.lax.Precision.HIGHEST
    h = jnp.maximum(jnp.einsum('nhwc,cd->nhwd', x, w1, precision=hp) * s1 + b1, 0.0)
    h = jax.lax.conv_general_dilated(
        h, w2_hwio, window_strides=(1, 1), padding=((1, 1), (1, 1)),
        dimension_numbers=('NHWC', 'HWIO', 'NHWC'), precision=hp)
    h = jnp.maximum(h * s2 + b2, 0.0)
    h = jnp.einsum('nhwc,cd->nhwd', h, w3, precision=hp) * s3 + b3
    pooled = jnp.mean(h, axis=(1, 2))                                   # (N, Cout)
    se = jnp.maximum(jnp.dot(pooled, wse1, precision=hp), 0.0)
    se = jax.nn.sigmoid(jnp.dot(se, wse2, precision=hp))                # (N, Cout)
    return jnp.maximum(h * se[:, None, None, :] + x, 0.0)


if __name__ == "__main__":
    # Small shapes consistent with BottleneckSe defaults:
    #   planes=32 -> width=32, out_channels=planes*4=128=inplanes (identity residual,
    #   lane-dense channels), SE hidden = 128//16 = 8.
    N, H, W = 2, 8, 8
    planes = 32
    inplanes = planes * 4        # 128
    width = planes               # 32
    cout = planes * 4            # 128
    cse = cout // 16             # 8

    key = jax.random.PRNGKey(0)
    ks = jax.random.split(key, 18)
    f32 = jnp.float32

    x = jax.random.normal(ks[0], (N, H, W, inplanes), dtype=f32)

    def fold_bn(kg, kb, km, kv, c, eps=1e-5):
        gamma = 1.0 + 0.1 * jax.random.normal(kg, (c,), dtype=f32)
        beta = 0.1 * jax.random.normal(kb, (c,), dtype=f32)
        mean = 0.1 * jax.random.normal(km, (c,), dtype=f32)
        var = jnp.abs(jax.random.normal(kv, (c,), dtype=f32)) + 0.5
        scale = gamma / jnp.sqrt(var + eps)
        bias = beta - mean * scale
        return scale.reshape(1, c), bias.reshape(1, c)

    # Synthetic conv / SE weights (1x1 convs and Linears stored as (Cin, Cout)).
    w1 = jax.random.normal(ks[1], (inplanes, width), dtype=f32) / jnp.sqrt(float(inplanes))
    w2 = jax.random.normal(ks[2], (3, 3, width, width), dtype=f32) / jnp.sqrt(9.0 * width)
    w3 = jax.random.normal(ks[3], (width, cout), dtype=f32) / jnp.sqrt(float(width))
    wse1 = jax.random.normal(ks[4], (cout, cse), dtype=f32) / jnp.sqrt(float(cout))
    wse2 = jax.random.normal(ks[5], (cse, cout), dtype=f32) / jnp.sqrt(float(cse))

    s1, b1 = fold_bn(ks[6], ks[7], ks[8], ks[9], width)
    s2, b2 = fold_bn(ks[10], ks[11], ks[12], ks[13], width)
    s3, b3 = fold_bn(ks[14], ks[15], ks[16], ks[17], cout)

    y = jax.block_until_ready(
        bottleneck_se(x, w1, s1, b1, w2, s2, b2, w3, s3, b3, wse1, wse2))
    y_ref = bottleneck_se_reference(x, w1, s1, b1, w2, s2, b2, w3, s3, b3, wse1, wse2)

    assert y.shape == x.shape and y.dtype == x.dtype
    # conv2/conv3 intentionally run with bf16 MXU operands (f32 accumulation) per the
    # perf review; the all-f32 HIGHEST-precision reference therefore differs by up to
    # a few e-2, while real bugs (wrong tap shift / mask / pool / residual) are O(1).
    err = float(jnp.max(jnp.abs(y - y_ref)))
    assert jnp.allclose(y, y_ref, atol=4e-2, rtol=4e-2), \
        f"mismatch vs reference, max|diff|={err}"
    print("KERNEL_OK")
</pallas_src>

<mosaic_0001>
module attributes {stable_mosaic.version = 11 : i64} {
  func.func @probe(%arg0: memref<64x128xf32, #tpu.memory_space<vmem>>, %arg1: memref<64x128xf32, #tpu.memory_space<vmem>>) attributes {dimension_semantics = [], scalar_prefetch = 0 : i64, scratch_operands = 0 : i64, tpu.core_type = #tpu.core_type<tc>} {
    %c0 = arith.constant 0 : index
    %c0_0 = arith.constant 0 : index
    %0 = vector.load %arg0[%c0, %c0_0] : memref<64x128xf32, #tpu.memory_space<vmem>>, vector<64x128xf32>
    %c9_i32 = arith.constant 9 : i32
    %1 = tpu.dynamic_rotate %0 by %c9_i32 dim 0 : vector<64x128xf32>, i32 -> vector<64x128xf32>
    %c0_1 = arith.constant 0 : index
    %c0_2 = arith.constant 0 : index
    %2 = vector.load %arg1[%c0_1, %c0_2] : memref<64x128xf32, #tpu.memory_space<vmem>>, vector<64x128xf32>
    tpu.vector_store %arg1[%c0_1, %c0_2], %1 {strides = array<i32>} : memref<64x128xf32, #tpu.memory_space<vmem>>, vector<64x128xf32>,
    return
  }
}

module attributes {stable_mosaic.version = 11 : i64} {
  func.func @bottleneck_se_kernel(%arg0: i32, %arg1: memref<1x64x128xf32, #tpu.memory_space<vmem>>, %arg2: memref<128x32xf32, #tpu.memory_space<vmem>>, %arg3: memref<1x32xf32, #tpu.memory_space<vmem>>, %arg4: memref<1x32xf32, #tpu.memory_space<vmem>>, %arg5: memref<288x32xbf16, #tpu.memory_space<vmem>>, %arg6: memref<1x32xf32, #tpu.memory_space<vmem>>, %arg7: memref<1x32xf32, #tpu.memory_space<vmem>>, %arg8: memref<32x128xbf16, #tpu.memory_space<vmem>>, %arg9: memref<1x128xf32, #tpu.memory_space<vmem>>, %arg10: memref<1x128xf32, #tpu.memory_space<vmem>>, %arg11: memref<128x8xf32, #tpu.memory_space<vmem>>, %arg12: memref<8x128xf32, #tpu.memory_space<vmem>>, %arg13: memref<1x64x128xf32, #tpu.memory_space<vmem>>) attributes {dimension_semantics = [#tpu.dimension_semantics<parallel>], iteration_bounds = array<i64: 2>, scalar_prefetch = 0 : i64, scratch_operands = 0 : i64, tpu.core_type = #tpu.core_type<tc>, window_params = [{transform_indices = @transform_0, window_bounds = array<i64: 1, 64, 128>}, {pipeline_mode = #tpu.pipeline_mode<synchronous>, transform_indices = @transform_1, window_bounds = array<i64: 128, 32>}, {pipeline_mode = #tpu.pipeline_mode<synchronous>, transform_indices = @transform_2, window_bounds = array<i64: 1, 32>}, {pipeline_mode = #tpu.pipeline_mode<synchronous>, transform_indices = @transform_3, window_bounds = array<i64: 1, 32>}, {pipeline_mode = #tpu.pipeline_mode<synchronous>, transform_indices = @transform_4, window_bounds = array<i64: 288, 32>}, {pipeline_mode = #tpu.pipeline_mode<synchronous>, transform_indices = @transform_5, window_bounds = array<i64: 1, 32>}, {pipeline_mode = #tpu.pipeline_mode<synchronous>, transform_indices = @transform_6, window_bounds = array<i64: 1, 32>}, {pipeline_mode = #tpu.pipeline_mode<synchronous>, transform_indices = @transform_7, window_bounds = array<i64: 32, 128>}, {pipeline_mode = #tpu.pipeline_mode<synchronous>, transform_indices = @transform_8, window_bounds = array<i64: 1, 128>}, {pipeline_mode = #tpu.pipeline_mode<synchronous>, transform_indices = @transform_9, window_bounds = array<i64: 1, 128>}, {pipeline_mode = #tpu.pipeline_mode<synchronous>, transform_indices = @transform_10, window_bounds = array<i64: 128, 8>}, {pipeline_mode = #tpu.pipeline_mode<synchronous>, transform_indices = @transform_11, window_bounds = array<i64: 8, 128>}, {transform_indices = @transform_12, window_bounds = array<i64: 1, 64, 128>}]} {
    %c0 = arith.constant 0 : index
    %c0_0 = arith.constant 0 : index
    %c0_1 = arith.constant 0 : index
    %0 = vector.load %arg1[%c0, %c0_0, %c0_1] : memref<1x64x128xf32, #tpu.memory_space<vmem>>, vector<1x64x128xf32>
    %1 = vector.shape_cast %0 : vector<1x64x128xf32> to vector<64x128xf32>
    %c0_2 = arith.constant 0 : index
    %c0_3 = arith.constant 0 : index
    %2 = vector.load %arg2[%c0_2, %c0_3] : memref<128x32xf32, #tpu.memory_space<vmem>>, vector<128x32xf32>
    %cst = arith.constant dense<0.000000e+00> : vector<64x32xf32>
    %3 = tpu.matmul %1, %2, %cst {dimension_numbers = #tpu.dot_dimension_numbers<[1], [0], [0], [1], [0, 0, 1, 1], [], []>} : vector<64x128xf32>, vector<128x32xf32>, vector<64x32xf32> -> vector<64x32xf32>
    %c0_4 = arith.constant 0 : index
    %c0_5 = arith.constant 0 : index
    %4 = vector.load %arg3[%c0_4, %c0_5] : memref<1x32xf32, #tpu.memory_space<vmem>>, vector<1x32xf32>
    %5 = vector.broadcast %4 : vector<1x32xf32> to vector<64x32xf32>
    %6 = arith.mulf %3, %5 : vector<64x32xf32>
    %c0_6 = arith.constant 0 : index
    %c0_7 = arith.constant 0 : index
    %7 = vector.load %arg4[%c0_6, %c0_7] : memref<1x32xf32, #tpu.memory_space<vmem>>, vector<1x32xf32>
    %8 = vector.broadcast %7 : vector<1x32xf32> to vector<64x32xf32>
    %9 = arith.addf %6, %8 : vector<64x32xf32>
    %cst_8 = arith.constant 0.000000e+00 : f32
    %10 = vector.broadcast %cst_8 : f32 to vector<64x32xf32>
    %11 = arith.maximumf %9, %10 : vector<64x32xf32>
    %12 = tpu.iota {dimensions = array<i32: 0>} : vector<64x1xi32>
    %c8_i32 = arith.constant 8 : i32
    %c0_i32 = arith.constant 0 : i32
    %13 = arith.cmpi eq, %c8_i32, %c0_i32 : i32
    %c1_i32 = arith.constant 1 : i32
    %14 = arith.select %13, %c1_i32, %c8_i32 : i32
    %15 = vector.broadcast %14 : i32 to vector<64x1xi32>
    %16 = arith.remsi %12, %15 : vector<64x1xi32>
    %c0_i32_9 = arith.constant 0 : i32
    %17 = vector.broadcast %c0_i32_9 : i32 to vector<64x1xi32>
    %18 = arith.cmpi ne, %16, %17 : vector<64x1xi32>
    %c0_i32_10 = arith.constant 0 : i32
    %19 = vector.broadcast %c0_i32_10 : i32 to vector<64x1xi32>
    %20 = arith.cmpi slt, %16, %19 : vector<64x1xi32>
    %c0_i32_11 = arith.constant 0 : i32
    %21 = arith.cmpi slt, %14, %c0_i32_11 : i32
    %22 = vector.broadcast %21 : i1 to vector<64x1xi1>
    %23 = vector.broadcast %22 : vector<64x1xi1> to vector<64x1xi1>
    %24 = arith.xori %20, %23 : vector<64x1xi1>
    %25 = arith.andi %24, %18 : vector<64x1xi1>
    %26 = vector.broadcast %14 : i32 to vector<64x1xi32>
    %27 = arith.addi %16, %26 : vector<64x1xi32>
    %28 = arith.select %25, %27, %16 : vector<64x1xi1>, vector<64x1xi32>
    %c6_i32 = arith.constant 6 : i32
    %29 = vector.broadcast %c6_i32 : i32 to vector<64x1xi32>
    %30 = arith.cmpi sle, %28, %29 : vector<64x1xi32>
    %c1_i32_12 = arith.constant 1 : i32
    %31 = vector.broadcast %c1_i32_12 : i32 to vector<64x1xi32>
    %32 = arith.cmpi sge, %28, %31 : vector<64x1xi32>
    %c56_i32 = arith.constant 56 : i32
    %33 = vector.broadcast %c56_i32 : i32 to vector<64x1xi32>
    %34 = arith.cmpi slt, %12, %33 : vector<64x1xi32>
    %c8_i32_13 = arith.constant 8 : i32
    %35 = vector.broadcast %c8_i32_13 : i32 to vector<64x1xi32>
    %36 = arith.cmpi sge, %12, %35 : vector<64x1xi32>
    %cst_14 = arith.constant 0.000000e+00 : f32
    %37 = vector.shape_cast %30 : vector<64x1xi1> to vector<64x1xi1>
    %38 = vector.broadcast %37 : vector<64x1xi1> to vector<64x32xi1>
    %39 = vector.broadcast %cst_14 : f32 to vector<64x32xf32>
    %40 = arith.select %38, %11, %39 : vector<64x32xi1>, vector<64x32xf32>
    %cst_15 = arith.constant 0.000000e+00 : f32
    %41 = vector.shape_cast %32 : vector<64x1xi1> to vector<64x1xi1>
    %42 = vector.broadcast %41 : vector<64x1xi1> to vector<64x32xi1>
    %43 = vector.broadcast %cst_15 : f32 to vector<64x32xf32>
    %44 = arith.select %42, %11, %43 : vector<64x32xi1>, vector<64x32xf32>
    %45 = vector.extract_strided_slice %40 {offsets = [63, 0], sizes = [1, 32], strides = [1, 1]} : vector<64x32xf32> to vector<1x32xf32>
    %46 = vector.extract_strided_slice %40 {offsets = [0, 0], sizes = [63, 32], strides = [1, 1]} : vector<64x32xf32> to vector<63x32xf32>
    %47 = tpu.concatenate %45, %46 in 0 : vector<1x32xf32>, vector<63x32xf32> -> vector<64x32xf32>
    %48 = vector.extract_strided_slice %44 {offsets = [1, 0], sizes = [63, 32], strides = [1, 1]} : vector<64x32xf32> to vector<63x32xf32>
    %49 = vector.extract_strided_slice %44 {offsets = [0, 0], sizes = [1, 32], strides = [1, 1]} : vector<64x32xf32> to vector<1x32xf32>
    %50 = tpu.concatenate %48, %49 in 0 : vector<63x32xf32>, vector<1x32xf32> -> vector<64x32xf32>
    %51 = tpu.concatenate %47, %11, %50 in 1 : vector<64x32xf32>, vector<64x32xf32>, vector<64x32xf32> -> vector<64x96xf32>
    %cst_16 = arith.constant 0.000000e+00 : f32
    %52 = vector.shape_cast %34 : vector<64x1xi1> to vector<64x1xi1>
    %53 = vector.broadcast %52 : vector<64x1xi1> to vector<64x96xi1>
    %54 = vector.broadcast %cst_16 : f32 to vector<64x96xf32>
    %55 = arith.select %53, %51, %54 : vector<64x96xi1>, vector<64x96xf32>
    %56 = vector.extract_strided_slice %55 {offsets = [56, 0], sizes = [8, 96], strides = [1, 1]} : vector<64x96xf32> to vector<8x96xf32>
    %57 = vector.extract_strided_slice %55 {offsets = [0, 0], sizes = [56, 96], strides = [1, 1]} : vector<64x96xf32> to vector<56x96xf32>
    %58 = tpu.concatenate %56, %57 in 0 : vector<8x96xf32>, vector<56x96xf32> -> vector<64x96xf32>
    %cst_17 = arith.constant 0.000000e+00 : f32
    %59 = vector.shape_cast %36 : vector<64x1xi1> to vector<64x1xi1>
    %60 = vector.broadcast %59 : vector<64x1xi1> to vector<64x96xi1>
    %61 = vector.broadcast %cst_17 : f32 to vector<64x96xf32>
    %62 = arith.select %60, %51, %61 : vector<64x96xi1>, vector<64x96xf32>
    %63 = vector.extract_strided_slice %62 {offsets = [8, 0], sizes = [56, 96], strides = [1, 1]} : vector<64x96xf32> to vector<56x96xf32>
    %64 = vector.extract_strided_slice %62 {offsets = [0, 0], sizes = [8, 96], strides = [1, 1]} : vector<64x96xf32> to vector<8x96xf32>
    %65 = tpu.concatenate %63, %64 in 0 : vector<56x96xf32>, vector<8x96xf32> -> vector<64x96xf32>
    %66 = arith.truncf %58 : vector<64x96xf32> to vector<64x96xbf16>
    %67 = arith.truncf %51 : vector<64x96xf32> to vector<64x96xbf16>
    %68 = arith.truncf %65 : vector<64x96xf32> to vector<64x96xbf16>
    %69 = tpu.concatenate %66, %67, %68 in 1 : vector<64x96xbf16>, vector<64x96xbf16>, vector<64x96xbf16> -> vector<64x288xbf16>
    %c0_18 = arith.constant 0 : index
    %c0_19 = arith.constant 0 : index
    %70 = vector.load %arg5[%c0_18, %c0_19] : memref<288x32xbf16, #tpu.memory_space<vmem>>, vector<288x32xbf16>
    %cst_20 = arith.constant dense<0.000000e+00> : vector<64x32xf32>
    %71 = tpu.matmul %69, %70, %cst_20 {dimension_numbers = #tpu.dot_dimension_numbers<[1], [0], [0], [1], [0, 0, 1, 1], [], []>} : vector<64x288xbf16>, vector<288x32xbf16>, vector<64x32xf32> -> vector<64x32xf32>
    %c0_21 = arith.constant 0 : index
    %c0_22 = arith.constant 0 : index
    %72 = vector.load %arg6[%c0_21, %c0_22] : memref<1x32xf32, #tpu.memory_space<vmem>>, vector<1x32xf32>
    %73 = vector.broadcast %72 : vector<1x32xf32> to vector<64x32xf32>
    %74 = arith.mulf %71, %73 : vector<64x32xf32>
    %c0_23 = arith.constant 0 : index
    %c0_24 = arith.constant 0 : index
    %75 = vector.load %arg7[%c0_23, %c0_24] : memref<1x32xf32, #tpu.memory_space<vmem>>, vector<1x32xf32>
    %76 = vector.broadcast %75 : vector<1x32xf32> to vector<64x32xf32>
    %77 = arith.addf %74, %76 : vector<64x32xf32>
    %cst_25 = arith.constant 0.000000e+00 : f32
    %78 = vector.broadcast %cst_25 : f32 to vector<64x32xf32>
    %79 = arith.maximumf %77, %78 : vector<64x32xf32>
    %80 = arith.truncf %79 : vector<64x32xf32> to vector<64x32xbf16>
    %c0_26 = arith.constant 0 : index
    %c0_27 = arith.constant 0 : index
    %81 = vector.load %arg8[%c0_26, %c0_27] : memref<32x128xbf16, #tpu.memory_space<vmem>>, vector<32x128xbf16>
    %cst_28 = arith.constant dense<0.000000e+00> : vector<64x128xf32>
    %82 = tpu.matmul %80, %81, %cst_28 {dimension_numbers = #tpu.dot_dimension_numbers<[1], [0], [0], [1], [0, 0, 1, 1], [], []>} : vector<64x32xbf16>, vector<32x128xbf16>, vector<64x128xf32> -> vector<64x128xf32>
    %c0_29 = arith.constant 0 : index
    %c0_30 = arith.constant 0 : index
    %83 = vector.load %arg9[%c0_29, %c0_30] : memref<1x128xf32, #tpu.memory_space<vmem>>, vector<1x128xf32>
    %84 = vector.broadcast %83 : vector<1x128xf32> to vector<64x128xf32>
    %85 = arith.mulf %82, %84 : vector<64x128xf32>
    %c0_31 = arith.constant 0 : index
    %c0_32 = arith.constant 0 : index
    %86 = vector.load %arg10[%c0_31, %c0_32] : memref<1x128xf32, #tpu.memory_space<vmem>>, vector<1x128xf32>
    %87 = vector.broadcast %86 : vector<1x128xf32> to vector<64x128xf32>
    %88 = arith.addf %85, %87 : vector<64x128xf32>
    %cst_33 = arith.constant 1.562500e-02 : f32
    %89 = vector.broadcast %cst_33 : f32 to vector<1x64xf32>
    %cst_34 = arith.constant dense<0.000000e+00> : vector<1x128xf32>
    %90 = tpu.matmul %89, %88, %cst_34 {dimension_numbers = #tpu.dot_dimension_numbers<[1], [0], [0], [1], [0, 0, 1, 1], [], []>} : vector<1x64xf32>, vector<64x128xf32>, vector<1x128xf32> -> vector<1x128xf32>
    %c0_35 = arith.constant 0 : index
    %c0_36 = arith.constant 0 : index
    %91 = vector.load %arg11[%c0_35, %c0_36] : memref<128x8xf32, #tpu.memory_space<vmem>>, vector<128x8xf32>
    %cst_37 = arith.constant dense<0.000000e+00> : vector<1x8xf32>
    %92 = tpu.matmul %90, %91, %cst_37 {dimension_numbers = #tpu.dot_dimension_numbers<[1], [0], [0], [1], [0, 0, 1, 1], [], []>} : vector<1x128xf32>, vector<128x8xf32>, vector<1x8xf32> -> vector<1x8xf32>
    %cst_38 = arith.constant 0.000000e+00 : f32
    %93 = vector.broadcast %cst_38 : f32 to vector<1x8xf32>
    %94 = arith.maximumf %92, %93 : vector<1x8xf32>
    %c0_39 = arith.constant 0 : index
    %c0_40 = arith.constant 0 : index
    %95 = vector.load %arg12[%c0_39, %c0_40] : memref<8x128xf32, #tpu.memory_space<vmem>>, vector<8x128xf32>
    %cst_41 = arith.constant dense<0.000000e+00> : vector<1x128xf32>
    %96 = tpu.matmul %94, %95, %cst_41 {dimension_numbers = #tpu.dot_dimension_numbers<[1], [0], [0], [1], [0, 0, 1, 1], [], []>} : vector<1x8xf32>, vector<8x128xf32>, vector<1x128xf32> -> vector<1x128xf32>
    %97 = arith.negf %96 : vector<1x128xf32>
    %98 = math.exp %97 : vector<1x128xf32>
    %cst_42 = arith.constant 1.000000e+00 : f32
    %99 = vector.broadcast %cst_42 : f32 to vector<1x128xf32>
    %100 = arith.addf %99, %98 : vector<1x128xf32>
    %101 = arith.divf %99, %100 : vector<1x128xf32>
    %102 = vector.broadcast %101 : vector<1x128xf32> to vector<64x128xf32>
    %103 = arith.mulf %88, %102 : vector<64x128xf32>
    %104 = arith.addf %103, %1 : vector<64x128xf32>
    %cst_43 = arith.constant 0.000000e+00 : f32
    %105 = vector.broadcast %cst_43 : f32 to vector<64x128xf32>
    %106 = arith.maximumf %104, %105 : vector<64x128xf32>
    %c0_44 = arith.constant 0 : index
    %c0_45 = arith.constant 0 : index
    %c0_46 = arith.constant 0 : index
    %107 = vector.load %arg13[%c0_44, %c0_45, %c0_46] : memref<1x64x128xf32, #tpu.memory_space<vmem>>, vector<1x64x128xf32>
    %108 = vector.shape_cast %107 : vector<1x64x128xf32> to vector<64x128xf32>
    %109 = vector.shape_cast %106 : vector<64x128xf32> to vector<1x64x128xf32>
    tpu.vector_store %arg13[%c0_44, %c0_45, %c0_46], %109 {strides = array<i32>} : memref<1x64x128xf32, #tpu.memory_space<vmem>>, vector<1x64x128xf32>,
    return
  }
  func.func @transform_0(%arg0: i32) -> (i32, i32, i32) {
    %c0_i32 = arith.constant 0 : i32
    %c0_i32_0 = arith.constant 0 : i32
    %c0_i32_1 = arith.constant 0 : i32
    return %arg0, %c0_i32, %c0_i32_0 : i32, i32, i32
  }
  func.func @transform_1(%arg0: i32) -> (i32, i32) {
    %c0_i32 = arith.constant 0 : i32
    %c0_i32_0 = arith.constant 0 : i32
    %c0_i32_1 = arith.constant 0 : i32
    return %c0_i32, %c0_i32_0 : i32, i32
  }
  func.func @transform_2(%arg0: i32) -> (i32, i32) {
    %c0_i32 = arith.constant 0 : i32
    %c0_i32_0 = arith.constant 0 : i32
    %c0_i32_1 = arith.constant 0 : i32
    return %c0_i32, %c0_i32_0 : i32, i32
  }
  func.func @transform_3(%arg0: i32) -> (i32, i32) {
    %c0_i32 = arith.constant 0 : i32
    %c0_i32_0 = arith.constant 0 : i32
    %c0_i32_1 = arith.constant 0 : i32
    return %c0_i32, %c0_i32_0 : i32, i32
  }
  func.func @transform_4(%arg0: i32) -> (i32, i32) {
    %c0_i32 = arith.constant 0 : i32
    %c0_i32_0 = arith.constant 0 : i32
    %c0_i32_1 = arith.constant 0 : i32
    return %c0_i32, %c0_i32_0 : i32, i32
  }
  func.func @transform_5(%arg0: i32) -> (i32, i32) {
    %c0_i32 = arith.constant 0 : i32
    %c0_i32_0 = arith.constant 0 : i32
    %c0_i32_1 = arith.constant 0 : i32
    return %c0_i32, %c0_i32_0 : i32, i32
  }
  func.func @transform_6(%arg0: i32) -> (i32, i32) {
    %c0_i32 = arith.constant 0 : i32
    %c0_i32_0 = arith.constant 0 : i32
    %c0_i32_1 = arith.constant 0 : i32
    return %c0_i32, %c0_i32_0 : i32, i32
  }
  func.func @transform_7(%arg0: i32) -> (i32, i32) {
    %c0_i32 = arith.constant 0 : i32
    %c0_i32_0 = arith.constant 0 : i32
    %c0_i32_1 = arith.constant 0 : i32
    return %c0_i32, %c0_i32_0 : i32, i32
  }
  func.func @transform_8(%arg0: i32) -> (i32, i32) {
    %c0_i32 = arith.constant 0 : i32
    %c0_i32_0 = arith.constant 0 : i32
    %c0_i32_1 = arith.constant 0 : i32
    return %c0_i32, %c0_i32_0 : i32, i32
  }
  func.func @transform_9(%arg0: i32) -> (i32, i32) {
    %c0_i32 = arith.constant 0 : i32
    %c0_i32_0 = arith.constant 0 : i32
    %c0_i32_1 = arith.constant 0 : i32
    return %c0_i32, %c0_i32_0 : i32, i32
  }
  func.func @transform_10(%arg0: i32) -> (i32, i32) {
    %c0_i32 = arith.constant 0 : i32
    %c0_i32_0 = arith.constant 0 : i32
    %c0_i32_1 = arith.constant 0 : i32
    return %c0_i32, %c0_i32_0 : i32, i32
  }
  func.func @transform_11(%arg0: i32) -> (i32, i32) {
    %c0_i32 = arith.constant 0 : i32
    %c0_i32_0 = arith.constant 0 : i32
    %c0_i32_1 = arith.constant 0 : i32
    return %c0_i32, %c0_i32_0 : i32, i32
  }
  func.func @transform_12(%arg0: i32) -> (i32, i32, i32) {
    %c0_i32 = arith.constant 0 : i32
    %c0_i32_0 = arith.constant 0 : i32
    %c0_i32_1 = arith.constant 0 : i32
    return %arg0, %c0_i32, %c0_i32_0 : i32, i32, i32
  }
}

</mosaic_0001>

<bundles_post_ra>
// kernel: tpu_custom_call.1
= control target key start
LH: loop header
LB: loop body
LE: loop exit
PB: predicated region body
PF: predicated region fallthrough
CT: control target
= control target key end

     0   :  { %6 = vsyncpa [#allocation3], 0  ;;  %s157_s0 = inlined_call_operand.hbm [shape: f32[64,128], index: 0, kind: input, shape index: {}]   ;;  %s158_s1 = inlined_call_operand.hbm [shape: f32[64,128], index: 1, kind: output, shape index: {}]  }
   0x1   :  { %7 = vsyncpa [#allocation4], 0  ;;  %s123_s6 = smov [#allocation2]  }
   0x2   :  { %s13_s7 = sshll.u32 %s123_s6, 4  ;;  %s14_s7 = int_to_ptr.vmem [resolvable:$true] %s13_s7 }
   0x3   :  { %s87_s8 = scalar_lea.vmem %s14_s7, 1024  ;;  %p92_p1 = scmp.lt.s32.totalorder %s14_s7, %s14_s7 }
   0x4   :  { %p88_p0 = scmp.ne.s32.totalorder %s14_s7, %s87_s8  ;;  %p93_p2 = scmp.lt.s32.totalorder %s87_s8, %s87_s8 }
   0x6   :  { %p94_p3 = por %p93_p2, %p92_p1 }
   0x8   :  { %p95_p4 = pnand %p94_p3, %p88_p0 }
   0xa   :  { %98 = shalt.err (!%p95_p4)
}
   0xb   :  { %s124_s9 = smov 128   ;;  %s125_s10 = smov 8  }
   0xc   :  { %19 = dma.hbm_to_vmem [thread:$0]  %s157_s0, 1024, %s14_s7, [#allocation3], %s124_s9, %s124_s9, %s125_s10  }
   0xd   :  { %119 = dma.done.wait [#allocation3], 1024  }
   0xe   :  { %120 = vsyncadd [#allocation3], 4294966272  ;;  %v39_v0 = vlaneseq  ;;  %v29_v2 = vld [vmem:[#allocation2 + $0x30] sm:$0xff]  ;;  %v30_v3 = vld [vmem:[#allocation2 + $0x38] sm:$0xff]  ;;  %s126_s13 = smov [#allocation5]  }
   0xf   :  { %v23_v4 = vld [vmem:[#allocation2] sm:$0xff]  ;;  %s63_s14 = sshll.u32 %s126_s13, 4  ;;  %v37_v5 = vrot.slane %v29_v2, 7  ;;  %v38_v6 = vrot.slane %v30_v3, 7  ;;  %v24_v8 = vld [vmem:[#allocation2 + $0x8] sm:$0xff]  ;;  %v25_v9 = vld [vmem:[#allocation2 + $0x10] sm:$0xff]  ;;  %s64_s14 = int_to_ptr.vmem [resolvable:$true] %s63_s14 }
  0x10   :  { %v40_v1 = vshrl.u32 %v39_v0, 7  ;;  %v31_v7 = vrot.slane %v23_v4, 7  ;;  %v26_v10 = vld [vmem:[#allocation2 + $0x18] sm:$0xff]  ;;  %v32_v11 = vrot.slane %v24_v8, 7  ;;  %v33_v12 = vrot.slane %v25_v9, 7  ;;  %v27_v14 = vld [vmem:[#allocation2 + $0x20] sm:$0xff]  ;;  %p104_p6 = scmp.lt.s32.totalorder %s64_s14, %s64_s14 }
  0x11   :  { %v34_v13 = vrot.slane %v26_v10, 7  ;;  %v28_v15 = vld [vmem:[#allocation2 + $0x28] sm:$0xff]  ;;  %v35_v18 = vrot.slane %v27_v14, 7  ;;  %s99_s0 = scalar_lea.vmem %s64_s14, 1024 }
  0x12   :  { %vm41_vm0 = vcmp.lt.s32.totalorder %v40_v1, 1  ;;  %v36_v19 = vrot.slane %v28_v15, 7  ;;  %p100_p5 = scmp.ne.s32.totalorder %s64_s14, %s99_s0  ;;  %p105_p7 = scmp.lt.s32.totalorder %s99_s0, %s99_s0 }
  0x13   :  { %v42_v16 = vsel %vm41_vm0, %v37_v5, %v38_v6  ;;  %v49_v17 = vsel %vm41_vm0, %v38_v6, %v31_v7  ;;  %v48_v20 = vsel %vm41_vm0, %v31_v7, %v32_v11  ;;  %v47_v21 = vsel %vm41_vm0, %v32_v11, %v33_v12 }
  0x14   :  { %50 = vst [vmem:[#allocation5] sm:$0xff] %v42_v16  ;;  %51 = vst [vmem:[#allocation5 + $0x8] sm:$0xff] %v49_v17  ;;  %v46_v22 = vsel %vm41_vm0, %v33_v12, %v34_v13  ;;  %v45_v23 = vsel %vm41_vm0, %v34_v13, %v35_v18  ;;  %v44_v24 = vsel %vm41_vm0, %v35_v18, %v36_v19  ;;  %p106_p8 = por %p105_p7, %p104_p6 }
  0x15   :  { %52 = vst [vmem:[#allocation5 + $0x10] sm:$0xff] %v48_v20  ;;  %53 = vst [vmem:[#allocation5 + $0x18] sm:$0xff] %v47_v21  ;;  %v43_v25 = vsel %vm41_vm0, %v36_v19, %v37_v5 }
  0x16   :  { %54 = vst [vmem:[#allocation5 + $0x20] sm:$0xff] %v46_v22  ;;  %55 = vst [vmem:[#allocation5 + $0x28] sm:$0xff] %v45_v23  ;;  %p107_p9 = pnand %p106_p8, %p100_p5 }
  0x17   :  { %56 = vst [vmem:[#allocation5 + $0x30] sm:$0xff] %v44_v24  ;;  %57 = vst [vmem:[#allocation5 + $0x38] sm:$0xff] %v43_v25 }
  0x18   :  { %110 = shalt.err (!%p107_p9)
}
  0x19   :  { %69 = dma.vmem_to_hbm [thread:$0]  %s64_s14, 1024, %s158_s1, [#allocation4], %s124_s9, %s124_s9, %s125_s10  }
  0x1a   :  { %121 = dma.done.wait [#allocation4], 1024  }
  0x1b   :  { %122 = vsyncadd [#allocation4], 4294966272 }
  0x1c   :  { %73 = vsyncpa [#allocation3], 1 }
  0x1d   :  { %74 = vsyncpa [#allocation4], 1 }

// kernel: tpu_custom_call.1
= control target key start
LH: loop header
LB: loop body
LE: loop exit
PB: predicated region body
PF: predicated region fallthrough
CT: control target
= control target key end

     0   :  { %17 = vsyncpa [#allocation3], 0  ;;  %s2927_s0 = inlined_call_operand.vmem [shape: f32[2,64,128], index: 0, kind: input, shape index: {}]   ;;  %s2928_s1 = inlined_call_operand.vmem [shape: f32[128,32], index: 1, kind: input, shape index: {}]   ;;  %s2929_s2 = inlined_call_operand.vmem [shape: f32[1,32], index: 2, kind: input, shape index: {}]   ;;  %s2930_s3 = inlined_call_operand.vmem [shape: f32[1,32], index: 3, kind: input, shape index: {}]   ;;  %s2931_s4 = inlined_call_operand.vmem [shape: bf16[288,32], index: 4, kind: input, shape index: {}]   ;;  %s2932_s5 = inlined_call_operand.vmem [shape: f32[1,32], index: 5, kind: input, shape index: {}]   ;;  %s2933_s6 = inlined_call_operand.vmem [shape: f32[1,32], index: 6, kind: input, shape index: {}]   ;;  %s2934_s7 = inlined_call_operand.vmem [shape: bf16[32,128], index: 7, kind: input, shape index: {}]   ;;  %s2935_s8 = inlined_call_operand.vmem [shape: f32[1,128], index: 8, kind: input, shape index: {}]   ;;  %s2936_s9 = inlined_call_operand.vmem [shape: f32[1,128], index: 9, kind: input, shape index: {}]   ;;  %s2937_s10 = inlined_call_operand.vmem [shape: f32[128,8], index: 10, kind: input, shape index: {}]   ;;  %s2938_s11 = inlined_call_operand.vmem [shape: f32[8,128], index: 11, kind: input, shape index: {}]   ;;  %s2939_s12 = inlined_call_operand.hbm [shape: f32[2,64,128], index: 12, kind: output, shape index: {}]  }
   0x1   :  { %19 = vsyncpa [#allocation3 + $0x1], 0  ;;  %s2334_s21 = smov 0   ;;  %s2336_s22 = smov 0  }
   0x2   :  { %s2338_s23 = smov 0   ;;  %s2340_s24 = smov 0  }
   0x3 LB: > { %2943 = sst [smem:[#allocation5_spill]] %s2254_s23  ;;  %s2355_s25 = sadd.s32 4294967295, %s2258_s24   ;;  %s2258_s24 = sphi %s2340_s24, %s2984_s24   ;;  %s2254_s23 = sphi %s2338_s23, %s2981_s23   ;;  %s2250_s22 = sphi %s2336_s22, %s2983_s22   ;;  %s2246_s21 = sphi %s2334_s21, %s2982_s21  }
   0x4   : > { %s1814_s26 = sadd.s32 4294967294, %s2258_s24   ;;  %s2359_s27 = sadd.s32 1, %s2258_s24  }
   0x5   : > { %s289_s28 = sadd.s32 1, %s2254_s23  ;;  %s286_s29 = ssub.s32 %s2258_s24, %s2359_s27 }
   0x6   : > { %p299_p0 = scmp.ne.s32.totalorder %s2254_s23, %s2250_s22  ;;  %p287_p1 = scmp.eq.s32.totalorder %s286_s29, 0 }
   0x7   : > { %p300_p2 = scmp.eq.s32.totalorder %s2355_s25, 1  ;;  %p305_p3 = scmp.ne.s32.totalorder %s2250_s22, %s2246_s21 }
   0x8   : > { %p306_p4 = scmp.eq.s32.totalorder %s1814_s26, 1  ;;  %p1817_p7 = scmp.ge.s32.totalorder %s2258_s24, 1 }
   0x9   : > { %s2370_s30 = scalar_select %p287_p1, %s2254_s23, %s289_s28  }
   0xa   : > { %p2372_p5 = por %p300_p2, %p299_p0  ;;  %p2376_p6 = por %p306_p4, %p305_p3 }
   0xb   : > { %2944 = sst [smem:[#allocation6_spill]] %s2370_s30  ;;  %p365_p8 = scmp.lt.s32.totalorder %s2258_s24, 3 }
   0xd   : > { %p366_p9 = pnand %p1817_p7, %p365_p8 }
   0xe   : > { %p407_p10 = scmp.lt.s32.totalorder (!%p366_p9), %s2355_s25, 1  ;;  %s2260_s23 = smov (!%p366_p9), 32  }
   0xf   : > { %369 = sbr.rel (%p366_p9) target bundleno = 1609 (0x649), region = 68  ;;  %s2262_s28 = smov (!%p366_p9), 96  }
  0x10   : > { %s2979_s30 = smov (!%p366_p9), 64   ;;  %s1864_s29 = sshll.u32 (!%p366_p9), %s2355_s25, 10 }
  0x11   : > { %s2881_s16 = scalar_lea.hbm (!%p366_p9), %s2939_s12, %s1864_s29  ;;  %s2266_s20 = smov (!%p366_p9), [#allocation2]  }
  0x14   : > { %v436_v0 = vld [vmem:[%s2928_s1 + $0x78] sm:$0xff]  ;;  %v435_v1 = vld [vmem:[%s2928_s1 + $0x70] sm:$0xff]  ;;  %v434_v2 = vld [vmem:[%s2928_s1 + $0x68] sm:$0xff]  ;;  %s408_s26 = scalar_select %p407_p10, %s2355_s25, 1  ;;  %v580_v24 = vlaneseq  ;;  %vm775_vm11 = vcmask 1040384   ;;  %vm807_vm12 = vcmask 1046528  }
  0x15   : > { %1969 = vmatprep.subr.mxu0 %v436_v0  ;;  %v433_v3 = vld [vmem:[%s2928_s1 + $0x60] sm:$0xff]  ;;  %v432_v4 = vld [vmem:[%s2928_s1 + $0x58] sm:$0xff]  ;;  %v431_v6 = vld [vmem:[%s2928_s1 + $0x50] sm:$0xff] }
  0x16   : > { %1970 = vmatpush3.msra.mxu0 %v436_v0  ;;  %s1863_s15 = sshll.u32 %s408_s26, 6  ;;  %v430_v7 = vld [vmem:[%s2928_s1 + $0x48] sm:$0xff]  ;;  %v429_v8 = vld [vmem:[%s2928_s1 + $0x40] sm:$0xff]  ;;  %v428_v9 = vld [vmem:[%s2928_s1 + $0x38] sm:$0xff]  ;;  %v2466_v25 = vshrl.u32 %v580_v24, 7  ;;  %s2202_s26 = sshll.u32 %s2266_s20, 4  ;;  %s2203_s26 = int_to_ptr.vmem [resolvable:$false] %s2202_s26 }
  0x17   : > { %1971 = vmatprep.subr.mxu0 %v435_v1  ;;  %s2399_s17 = scalar_lea.vmem %s2927_s0, %s1863_s15  ;;  %v427_v10 = vld [vmem:[%s2928_s1 + $0x30] sm:$0xff]  ;;  %v426_v11 = vld [vmem:[%s2928_s1 + $0x28] sm:$0xff]  ;;  %v425_v12 = vld [vmem:[%s2928_s1 + $0x20] sm:$0xff]  ;;  %s2941_s15 = smov 64  }
  0x18   : > { %1972 = vmatpush3.msra.mxu0 %v435_v1  ;;  %v413_v5 = vld [vmem:[%s2399_s17] sm:$0xff]  ;;  %v424_v13 = vld [vmem:[%s2928_s1 + $0x18] sm:$0xff]  ;;  %v423_v14 = vld [vmem:[%s2928_s1 + $0x10] sm:$0xff]  ;;  %v582_v26 = vadd.s32 8, %v2466_v25  ;;  %v584_v27 = vadd.s32 24, %v2466_v25  ;;  %v583_v28 = vadd.s32 16, %v2466_v25 }
  0x19   : > { %1973 = vmatprep.subr.mxu0 %v434_v2  ;;  %2001 = vmatprep.mubr.f32.mxu0 %v413_v5  ;;  %v422_v15 = vld [vmem:[%s2928_s1 + $0x8] sm:$0xff]  ;;  %v421_v16 = vld [vmem:[%s2928_s1] sm:$0xff]  ;;  %v2442_v18 = vld [vmem:[%s2399_s17 + $0x10] sm:$0xff]  ;;  %v593_v31 = vand.u32 7, %v2466_v25  ;;  %v586_v32 = vadd.s32 40, %v2466_v25  ;;  %v585_v33 = vadd.s32 32, %v2466_v25 }
  0x1a   : > { %1974 = vmatpush3.msra.mxu0 %v434_v2  ;;  %v2439_v17 = vld [vmem:[%s2399_s17 + $0x8] sm:$0xff]  ;;  %v2447_v19 = vld [vmem:[%s2399_s17 + $0x18] sm:$0xff]  ;;  %v2450_v20 = vld [vmem:[%s2399_s17 + $0x20] sm:$0xff]  ;;  %v600_v29 = vand.u32 7, %v582_v26  ;;  %v614_v34 = vand.u32 7, %v584_v27  ;;  %v607_v37 = vand.u32 7, %v583_v28 }
  0x1b   : > { %1975 = vmatprep.subr.mxu0 %v433_v3  ;;  %v2455_v21 = vld [vmem:[%s2399_s17 + $0x28] sm:$0xff]  ;;  %v2458_v22 = vld [vmem:[%s2399_s17 + $0x30] sm:$0xff]  ;;  %v2463_v23 = vld [vmem:[%s2399_s17 + $0x38] sm:$0xff]  ;;  %vm2489_vm1 = vcmp.le.s32.totalorder %v593_v31, 6  ;;  %v628_v42 = vand.u32 7, %v586_v32  ;;  %v621_v43 = vand.u32 7, %v585_v33 }
  0x1c   : > { %1976 = vmatpush3.msra.mxu0 %v433_v3  ;;  %v2474_v30 = vld [vmem:[%s2929_s2] ss:$0 sm:$0xff]  ;;  %vm2485_vm0 = vcmp.le.s32.totalorder %v600_v29, 6  ;;  %vm2493_vm2 = vcmp.ge.s32.totalorder %v600_v29, 1  ;;  %vm2499_vm3 = vcmp.le.s32.totalorder %v614_v34, 6  ;;  %vm2503_vm4 = vcmp.ge.s32.totalorder %v593_v31, 1 }
  0x1d   : > { %1977 = vmatprep.subr.mxu0 %v432_v4  ;;  %v2482_v36 = vld [vmem:[%s2930_s3] ss:$0 sm:$0xff]  ;;  %vm2507_vm5 = vcmp.le.s32.totalorder %v607_v37, 6  ;;  %v588_v51 = vadd.s32 56, %v2466_v25  ;;  %v587_v52 = vadd.s32 48, %v2466_v25  ;;  %vm2513_vm6 = vcmp.ge.s32.totalorder %v607_v37, 1 }
  0x1e   : > { %1978 = vmatpush3.msra.mxu0 %v432_v4  ;;  %vm2519_vm7 = vcmp.ge.s32.totalorder %v614_v34, 1  ;;  %vm2523_vm8 = vcmp.le.s32.totalorder %v628_v42, 6  ;;  %vm2527_vm9 = vcmp.ge.s32.totalorder %v628_v42, 1  ;;  %vm2531_vm10 = vcmp.le.s32.totalorder %v621_v43, 6  ;;  %v2173_v32 = vld [vmem:[%s2931_s4 + $0x78] sm:$0xff]  }
  0x1f   : > { %1979 = vmatprep.subr.mxu0 %v431_v6  ;;  %vm2541_vm13 = vcmp.ge.s32.totalorder %v621_v43, 1  ;;  %v642_v5 = vand.u32 7, %v588_v51  ;;  %1889 = vmatprep.subr.bf16.mxu1 %v2173_v32 }
  0x20   : > { %1980 = vmatpush3.msra.mxu0 %v431_v6  ;;  %v635_v6 = vand.u32 7, %v587_v52 }
  0x21   : > { %1981 = vmatprep.subr.mxu0 %v430_v7  ;;  %vm2560_vm14 = vcmp.le.s32.totalorder %v642_v5, 6  ;;  %vm2564_vm15 = vcmp.ge.s32.totalorder %v642_v5, 1 }
  0x22   : > { %1982 = vmatpush3.msra.mxu0 %v430_v7 }
  0x23   : > { %1983 = vmatprep.subr.mxu0 %v429_v8 }
  0x24   : > { %1984 = vmatpush3.msra.mxu0 %v429_v8 }
  0x25   : > { %1985 = vmatprep.subr.mxu0 %v428_v9 }
  0x26   : > { %1986 = vmatpush3.msra.mxu0 %v428_v9 }
  0x27   : > { %1987 = vmatprep.subr.mxu0 %v427_v10 }
  0x28   : > { %1988 = vmatpush3.msra.mxu0 %v427_v10 }
  0x29   : > { %1989 = vmatprep.subr.mxu0 %v426_v11 }
  0x2a   : > { %1990 = vmatpush3.msra.mxu0 %v426_v11 }
  0x2b   : > { %1991 = vmatprep.subr.mxu0 %v425_v12 }
  0x2c   : > { %1992 = vmatpush3.msra.mxu0 %v425_v12 }
  0x2d   : > { %1993 = vmatprep.subr.mxu0 %v424_v13 }
  0x2e   : > { %1994 = vmatpush3.msra.mxu0 %v424_v13 }
  0x2f   : > { %1995 = vmatprep.subr.mxu0 %v423_v14 }
  0x30   : > { %1996 = vmatpush3.msra.mxu0 %v423_v14 }
  0x31   : > { %1997 = vmatprep.subr.mxu0 %v422_v15 }
  0x32   : > { %1998 = vmatpush3.msra.mxu0 %v422_v15 }
  0x33   : > { %1999 = vmatprep.subr.mxu0 %v421_v16 }
  0x34   : > { %2000 = vmatpush3.msra.mxu0 %v421_v16 }
  0x35   : > { %2002 = vmatmul.mubr.f32.vlgmr.msra.gmra.mxu0 %v2439_v17 }
  0x36   : > { %2004 = vmatprep.mubr.f32.mxu0 %v2442_v18 }
  0x39   : > { %2005 = vmatmul.mubr.f32.gmra.mxu0 %v2447_v19 }
  0x3a   : > { %2007 = vmatprep.mubr.f32.mxu0 %v2450_v20 }
  0x3d   : > { %2008 = vmatmul.mubr.f32.gmra.mxu0 %v2455_v21 }
  0x3e   : > { %2010 = vmatprep.mubr.f32.mxu0 %v2458_v22 }
  0x41   : > { %2011 = vmatmul.mubr.f32.gmra.mxu0 %v2463_v23 }
  0xf5   : > { %v2003_v35 = vpop.f32.mrf.mxu0 }
  0xf6   : > { %v550_v38 = vmul.f32 %v2003_v35, %v2474_v30 }
  0xf7   : > { %v503_v40 = vpop.f32.mrf.mxu0 }
  0xf8   : > { %v565_v45 = vadd.f32 %v2482_v36, %v550_v38  ;;  %v549_v46 = vmul.f32 %v2474_v30, %v503_v40 }
  0xf9   : > { %v2006_v49 = vpop.f32.mrf.mxu0 }
  0xfa   : > { %v573_v54 = vmax.f32 %v565_v45, 0.0  ;;  %v564_v55 = vadd.f32 %v2482_v36, %v549_v46  ;;  %v552_v56 = vmul.f32 %v2006_v49, %v2474_v30 }
  0xfb   : > { %v513_v58 = vpop.f32.mrf.mxu0 }
  0xfc   : > { %v734_v62 = vsel %vm2485_vm0, %v573_v54, 0.0  ;;  %v572_v63 = vmax.f32 %v564_v55, 0.0  ;;  %v567_v0 = vadd.f32 %v2482_v36, %v552_v56  ;;  %v551_v1 = vmul.f32 %v2474_v30, %v513_v58 }
  0xfd   : > { %v2539_v2 = vrot.slane %v734_v62, 7  ;;  %v2009_v3 = vpop.f32.mrf.mxu0  ;;  %v758_v15 = vsel %vm2493_vm2, %v573_v54, 0.0  ;;  %vm2568_vm0 = vcmp.le.s32.totalorder %v635_v6, 6  ;;  %vm883_vm2 = vcmask 261120  }
  0xfe   : > { %v733_v7 = vsel %vm2489_vm1, %v572_v63, 0.0  ;;  %v575_v8 = vmax.f32 %v567_v0, 0.0  ;;  %v566_v9 = vadd.f32 %v2482_v36, %v551_v1  ;;  %v554_v10 = vmul.f32 %v2009_v3, %v2474_v30 }
  0xff   : > { %v2549_v11 = vrot.slane %v733_v7, 7  ;;  %v523_v12 = vpop.f32.mrf.mxu0  ;;  %v2143_v13 = vpack.i.bf16 %v573_v54, %v572_v63  ;;  %v757_v14 = vsel %vm2503_vm4, %v572_v63, 0.0  ;;  %vm2581_vm1 = vcmp.ge.s32.totalorder %v635_v6, 1 }
 0x100   : > { %v736_v16 = vsel %vm2499_vm3, %v575_v8, 0.0  ;;  %v574_v24 = vmax.f32 %v566_v9, 0.0  ;;  %v569_v26 = vadd.f32 %v2482_v36, %v554_v10  ;;  %v553_v27 = vmul.f32 %v2474_v30, %v523_v12 }
 0x101   : > { %2144 = vrot.lane.b32.xlu0 %v2143_v13, %s2260_s23  ;;  %v2012_v28 = vpop.f32.mrf.mxu0  ;;  %v2575_v33 = vsel %vm775_vm11, %v2549_v11, %v2539_v2  ;;  %v2587_v42 = vrot.slane %v757_v14, 1  ;;  %v809_v43 = vrot.slane %v758_v15, 1  ;;  %v760_v47 = vsel %vm2519_vm7, %v575_v8, 0.0 }
 0x102   : > { %v735_v34 = vsel %vm2507_vm5, %v574_v24, 0.0  ;;  %v577_v35 = vmax.f32 %v569_v26, 0.0  ;;  %v568_v37 = vadd.f32 %v2482_v36, %v553_v27  ;;  %v556_v38 = vmul.f32 %v2012_v28, %v2474_v30 }
 0x103   : > { %v533_v39 = vpop.f32.mrf.mxu0  ;;  %v759_v41 = vsel %vm2513_vm6, %v574_v24, 0.0  ;;  %v779_v48 = vrot.slane %v735_v34, 7  ;;  %v810_v58 = vsel %vm807_vm12, %v2587_v42, %v809_v43  ;;  %v2174_v34 = vld [vmem:[%s2931_s4 + $0x38] sm:$0xff]   ;;  %vm892_vm3 = vcmask 523264  }
 0x104   : > { %v738_v44 = vsel %vm2523_vm8, %v577_v35, 0.0  ;;  %v576_v45 = vmax.f32 %v568_v37, 0.0  ;;  %v571_v46 = vadd.f32 %v2482_v36, %v556_v38  ;;  %v762_v49 = vsel %vm2527_vm9, %v577_v35, 0.0  ;;  %1890 = vmatpush3.bf16.msra.mxu1 %v2174_v34  ;;  %v2176_v38 = vld [vmem:[%s2931_s4 + $0x30] sm:$0xff]  }
 0x105   : > { %v555_v50 = vmul.f32 %v2474_v30, %v533_v39  ;;  %838 = vrot.lane.b32.xlu0 %v574_v24, %s2260_s23  ;;  %v811_v51 = vrot.slane %v759_v41, 1  ;;  %v781_v30 = vrot.slane %v736_v16, 7  ;;  %v785_v60 = vrot.slane %v738_v44, 7  ;;  %v2177_v39 = vld [vmem:[%s2931_s4 + $0x68] sm:$0xff]   ;;  %v2180_v44 = vld [vmem:[%s2931_s4 + $0x20] sm:$0xff]  }
 0x106   : > { %v737_v52 = vsel %vm2531_vm10, %v576_v45, 0.0  ;;  %v761_v53 = vsel %vm2541_vm13, %v576_v45, 0.0  ;;  %v579_v54 = vmax.f32 %v571_v46, 0.0  ;;  %v2153_v55 = vpack.i.bf16 %v576_v45, %v575_v8  ;;  %v2178_v41 = vld [vmem:[%s2931_s4 + $0x28] sm:$0xff]   ;;  %v2182_v45 = vld [vmem:[%s2931_s4 + $0x18] sm:$0xff]   ;;  %v2183_v46 = vld [vmem:[%s2931_s4 + $0x50] sm:$0xff]  }
 0x107   : > { %v783_v56 = vrot.slane %v737_v52, 7  ;;  %v570_v57 = vadd.f32 %v2482_v36, %v555_v50  ;;  %v812_v59 = vsel %vm807_vm12, %v809_v43, %v811_v51  ;;  %v817_v63 = vrot.slane %v762_v49, 1  ;;  %v2179_v43 = vld [vmem:[%s2931_s4 + $0x60] sm:$0xff]   ;;  %v2186_v49 = vld [vmem:[%s2931_s4 + $0x8] sm:$0xff]  }
 0x108   : > { %v740_v62 = vsel %vm2560_vm14, %v579_v54, 0.0  ;;  %v2148_v61 = vpack.i.bf16 %v812_v59, %v810_v58  ;;  %v815_v0 = vrot.slane %v761_v53, 1  ;;  %v813_v36 = vrot.slane %v760_v47, 1  ;;  %v2184_v47 = vld [vmem:[%s2931_s4 + $0x10] sm:$0xff]   ;;  %v2188_v52 = vld [vmem:[%s2931_s4] sm:$0xff]  }
 0x109   : > { %v766_v1 = vrot.slane %v740_v62, 7  ;;  %v578_v3 = vmax.f32 %v570_v57, 0.0  ;;  %2154 = vrot.lane.b32.xlu0 %v2153_v55, %s2260_s23  ;;  %v2612_v4 = vsel %vm775_vm11, %v2539_v2, %v779_v48  ;;  %v2615_v5 = vsel %vm775_vm11, %v779_v48, %v781_v30  ;;  %v2185_v48 = vld [vmem:[%s2931_s4 + $0x48] sm:$0xff]  }
 0x10a   : > { %2149 = vrot.lane.b32.xlu1 %v2148_v61, %s2941_s15  ;;  %v2618_v6 = vsel %vm775_vm11, %v781_v30, %v783_v56  ;;  %v764_v10 = vsel %vm2564_vm15, %v579_v54, 0.0  ;;  %v814_v2 = vsel %vm807_vm12, %v811_v51, %v813_v36  ;;  %v816_v15 = vsel %vm807_vm12, %v813_v36, %v815_v0  ;;  %v2187_v51 = vld [vmem:[%s2931_s4 + $0x40] sm:$0xff]  }
 0x10b   : > { %v739_v7 = vsel %vm2568_vm0, %v578_v3, 0.0  ;;  %v763_v8 = vsel %vm2581_vm1, %v578_v3, 0.0  ;;  %v2163_v9 = vpack.i.bf16 %v578_v3, %v577_v35  ;;  %v2629_v13 = vsel %vm775_vm11, %v766_v1, %v2549_v11  ;;  %v2175_v35 = vld [vmem:[%s2931_s4 + $0x70] sm:$0xff]  }
 0x10c   : > { %v787_v12 = vrot.slane %v739_v7, 7  ;;  %v819_v14 = vrot.slane %v763_v8, 1  ;;  %v818_v16 = vsel %vm807_vm12, %v815_v0, %v817_v63  ;;  %v2635_v24 = vsel %vm775_vm11, %v783_v56, %v785_v60  ;;  %1891 = vmatprep.subr.bf16.mxu1 %v2175_v35 }
 0x10d   : > { %2164 = vrot.lane.b32.xlu0 %v2163_v9, %s2260_s23  ;;  %v821_v11 = vrot.slane %v764_v10, 1  ;;  %v2158_v28 = vpack.i.bf16 %v818_v16, %v816_v15  ;;  %1892 = vmatpush3.bf16.msra.mxu1 %v2176_v38  ;;  %vm985_vm4 = vcmask 785408   ;;  %vm2264_vm5 = vmmov 0  }
 0x10e   : > { %863 = vrot.lane.b32.xlu1 %v814_v2, %s2941_s15  ;;  %v2639_v26 = vsel %vm775_vm11, %v787_v12, %v766_v1  ;;  %v2642_v27 = vsel %vm775_vm11, %v785_v60, %v787_v12  ;;  %v820_v29 = vsel %vm807_vm12, %v817_v63, %v819_v14  ;;  %1893 = vmatprep.subr.bf16.mxu1 %v2177_v39  ;;  %vm1622_vm6 = vcmask 64512  }
 0x10f   : > { %v822_v31 = vsel %vm807_vm12, %v819_v14, %v821_v11  ;;  %v825_v40 = vsel %vm807_vm12, %v821_v11, %v2587_v42  ;;  %v2181_v42 = vld [vmem:[%s2931_s4 + $0x58] sm:$0xff]  }
 0x110   : > { %v2168_v37 = vpack.i.bf16 %v822_v31, %v820_v29 }
 0x111   : > { %848 = vrot.lane.b32.xlu0 %v579_v54, %s2260_s23  ;;  %1894 = vmatpush3.bf16.msra.mxu1 %v2178_v41  ;;  %v2703_v54 = vld [vmem:[%s2931_s4 + $0x88] sm:$0xff]  }
 0x112   : > { %2159 = vrot.lane.b32.xlu1 %v2158_v28, %s2941_s15  ;;  %1895 = vmatprep.subr.bf16.mxu1 %v2179_v43 }
 0x115   : > { %1896 = vmatpush3.bf16.msra.mxu1 %v2180_v44 }
 0x116   : > { %2169 = vrot.lane.b32.xlu1 %v2168_v37, %s2941_s15  ;;  %1897 = vmatprep.subr.bf16.mxu1 %v2181_v42  ;;  %v2263_v42 = vmov 0.0  }
 0x119   : > { %1898 = vmatpush3.bf16.msra.mxu1 %v2182_v45 }
 0x11a   : > { %873 = vrot.lane.b32.xlu1 %v825_v40, %s2941_s15  ;;  %1899 = vmatprep.subr.bf16.mxu1 %v2183_v46 }
 0x11d   : > { %1900 = vmatpush3.bf16.msra.mxu1 %v2184_v47 }
 0x11e   : > { %1901 = vmatprep.subr.bf16.mxu1 %v2185_v48  ;;  %v2190_v48 = vld [vmem:[%s2931_s4 + $0x80] sm:$0xff]  }
 0x121   : > { %1902 = vmatpush3.bf16.msra.mxu1 %v2186_v49 }
 0x122   : > { %1903 = vmatprep.subr.bf16.mxu1 %v2187_v51 }
 0x125   : > { %1904 = vmatpush3.bf16.msra.mxu1 %v2188_v52 }
 0x126   : > { %2013 = vmatprep.subr.bf16.mxu1 %v2703_v54 }
 0x173   : > { %v2145_v50 = vpop.permute.xlu0 %2144 }
 0x174   : > { %v2147_v55 = vunpack.i.h.bf16 %v2145_v50  ;;  %v2146_v56 = vunpack.i.l.bf16 %v2145_v50 }
 0x176   : > { %v884_v60 = vsel %vm883_vm2, %v2629_v13, %v2146_v56  ;;  %v885_v62 = vsel %vm883_vm2, %v2575_v33, %v2147_v55 }
 0x177   : > { %v839_v53 = vpop.permute.xlu0 %838 }
 0x178   : > { %v886_v0 = vsel %vm883_vm2, %v2612_v4, %v839_v53 }
 0x17b   : > { %v2155_v30 = vpop.permute.xlu0 %2154 }
 0x17c   : > { %v2150_v57 = vpop.permute.xlu1 %2149  ;;  %v2157_v7 = vunpack.i.h.bf16 %v2155_v30  ;;  %v2156_v8 = vunpack.i.l.bf16 %v2155_v30 }
 0x17d   : > { %v2152_v58 = vunpack.i.h.bf16 %v2150_v57  ;;  %v2151_v59 = vunpack.i.l.bf16 %v2150_v57 }
 0x17e   : > { %v887_v13 = vsel %vm883_vm2, %v2615_v5, %v2156_v8  ;;  %v888_v4 = vsel %vm883_vm2, %v2618_v6, %v2157_v7 }
 0x17f   : > { %v894_v61 = vsel %vm892_vm3, %v885_v62, %v2152_v58  ;;  %v893_v63 = vsel %vm892_vm3, %v884_v60, %v2151_v59  ;;  %v2165_v10 = vpop.permute.xlu0 %2164  ;;  %v2191_v62 = vld [vmem:[%s2934_s7 + $0x8] sm:$0xff]  }
 0x180   : > { %v864_v1 = vpop.permute.xlu1 %863  ;;  %v953_v3 = vpack.c.bf16 %v894_v61, %v893_v63  ;;  %v2167_v14 = vunpack.i.h.bf16 %v2165_v10  ;;  %v2166_v15 = vunpack.i.l.bf16 %v2165_v10  ;;  %2025 = vmatprep.subr.bf16.mxu0 %v2191_v62 }
 0x181   : > { %v895_v36 = vsel %vm892_vm3, %v886_v0, %v864_v1  ;;  %2026 = vmatpush3.bf16.msra.mxu0 %v2191_v62 }
 0x182   : > { %v950_v9 = vpack.c.bf16 %v895_v36, %v894_v61  ;;  %965 = vrot.lane.b32.xlu0 %v953_v3, %s2262_s28  ;;  %v889_v37 = vsel %vm883_vm2, %v2635_v24, %v2166_v15  ;;  %v890_v5 = vsel %vm883_vm2, %v2642_v27, %v2167_v14  ;;  %v2192_v61 = vld [vmem:[%s2934_s7] sm:$0xff]  }
 0x183   : > { %v849_v32 = vpop.permute.xlu0 %848  ;;  %2027 = vmatprep.subr.bf16.mxu0 %v2192_v61 }
 0x184   : > { %v2160_v12 = vpop.permute.xlu1 %2159  ;;  %977 = vrot.lane.b32.xlu1 %v950_v9, %s2979_s30  ;;  %v891_v39 = vsel %vm883_vm2, %v2639_v26, %v849_v32  ;;  %v949_v26 = vpack.c.bf16 %v893_v63, %v2263_v42 }
 0x185   : > { %v2162_v33 = vunpack.i.h.bf16 %v2160_v12  ;;  %v2161_v2 = vunpack.i.l.bf16 %v2160_v12  ;;  %2028 = vmatpush3.bf16.msra.mxu0 %v2192_v61 }
 0x186   : > { %2056 = vmatprep.subr.mxu0 %v2263_v42 }
 0x187   : > { %v896_v16 = vsel %vm892_vm3, %v887_v13, %v2161_v2  ;;  %v897_v11 = vsel %vm892_vm3, %v888_v4, %v2162_v33 }
 0x188   : > { %v2170_v28 = vpop.permute.xlu1 %2169  ;;  %v954_v29 = vpack.c.bf16 %v896_v16, %v895_v36  ;;  %v951_v31 = vpack.c.bf16 %v897_v11, %v896_v16 }
 0x189   : > { %v2172_v34 = vunpack.i.h.bf16 %v2170_v28  ;;  %v2171_v35 = vunpack.i.l.bf16 %v2170_v28 }
 0x18a   : > { %967 = vrot.lane.b32.xlu0 %v954_v29, %s2262_s28  ;;  %979 = vrot.lane.b32.xlu1 %v951_v31, %s2979_s30 }
 0x18b   : > { %v899_v6 = vsel %vm892_vm3, %v890_v5, %v2172_v34  ;;  %v898_v38 = vsel %vm892_vm3, %v889_v37, %v2171_v35  ;;  %v1845_v34 = vld [vmem:[%s2932_s5] ss:$0 sm:$0xff] }
 0x18c   : > { %v874_v40 = vpop.permute.xlu1 %873  ;;  %v955_v41 = vpack.c.bf16 %v898_v38, %v897_v11  ;;  %v952_v43 = vpack.c.bf16 %v899_v6, %v898_v38 }
 0x18d   : > { %v900_v44 = vsel %vm892_vm3, %v891_v39, %v874_v40 }
 0x18e   : > { %v956_v24 = vpack.c.bf16 %v900_v44, %v899_v6  ;;  %969 = vrot.lane.b32.xlu0 %v955_v41, %s2262_s28  ;;  %981 = vrot.lane.b32.xlu1 %v952_v43, %s2979_s30  ;;  %v960_v27 = vpack.c.bf16 %v2263_v42, %v900_v44  ;;  %v1846_v41 = vld [vmem:[%s2933_s6] ss:$0 sm:$0xff] }
 0x192   : > { %971 = vrot.lane.b32.xlu0 %v956_v24, %s2262_s28  ;;  %983 = vrot.lane.b32.xlu1 %v960_v27, %s2979_s30  ;;  %s404_s28 = sand.u32 1, %s2250_s22  }
 0x193   : > { %s1818_s30 = sshll.u32 %s404_s28, 6  ;;  %s2887_s18 = scalar_lea.sflag [#allocation3], %s404_s28 }
 0x194   : > { %s406_s23 = scalar_lea.vmem [#allocation2], %s1818_s30  ;;  %s2204_s30 = scalar_lea.vmem %s2203_s26, 2048 }
 0x195   : > { %s1752_s15 = sshll.u32 %s406_s23, 4  ;;  %s2883_s15 = int_to_ptr.vmem [resolvable:$true] %s1752_s15 }
 0x196   : > { %s2198_s19 = scalar_lea.vmem %s2883_s15, 1024  ;;  %p2205_p0 = scmp.lt.s32.totalorder %s2883_s15, %s2203_s26 }
 0x197   : > { %p2199_p11 = scmp.ne.s32.totalorder %s2883_s15, %s2198_s19  ;;  %p2206_p1 = scmp.lt.s32.totalorder %s2204_s30, %s2198_s19 }
 0x199   : > { %p2200_p12 = pnand %p2199_p11, %p2372_p5  ;;  %p2207_p2 = por %p2206_p1, %p2205_p0 }
 0x19b   : > { %p2201_p13 = pneg %p2200_p12 }
 0x19d   : > { %p2208_p3 = pnand %p2207_p2, %p2201_p13 }
 0x1f4   : > { %v966_v45 = vpop.permute.xlu0 %965 }
 0x1f5   : > { %v988_v49 = vsel %vm985_vm4, %v949_v26, %v966_v45 }
 0x1f6   : > { %v978_v46 = vpop.permute.xlu1 %977 }
 0x1f7   : > { %v1003_v47 = vsel %vm892_vm3, %v966_v45, %v978_v46 }
 0x1f8   : > { %1198 = vmatprep.mubr.bf16.mxu1 %v1003_v47 }
 0x1f9   : > { %1199 = vmatmul.mubr.bf16.vlgmr.msra.gmra.mxu1 %v988_v49 }
 0x1fa   : > { %2014 = vmatpush3.bf16.msra.mxu1 %v2703_v54 }
 0x1fb   : > { %2015 = vmatprep.subr.bf16.mxu1 %v2190_v48 }
 0x1fc   : > { %v968_v50 = vpop.permute.xlu0 %967  ;;  %v980_v51 = vpop.permute.xlu1 %979 }
 0x1fd   : > { %v1006_v52 = vsel %vm892_vm3, %v968_v50, %v980_v51  ;;  %v992_v56 = vsel %vm985_vm4, %v950_v9, %v968_v50 }
 0x1fe   : > { %1206 = vmatprep.mubr.bf16.mxu1 %v1006_v52  ;;  %2016 = vmatpush3.bf16.msra.mxu1 %v2190_v48 }
 0x1ff   : > { %2037 = vmatprep.subr.mxu1 %v2263_v42 }
 0x200   : > { %v970_v53 = vpop.permute.xlu0 %969  ;;  %v982_v55 = vpop.permute.xlu1 %981 }
 0x201   : > { %1207 = vmatmul.mubr.bf16.gmra.mxu1 %v992_v56  ;;  %v1009_v57 = vsel %vm892_vm3, %v970_v53, %v982_v55  ;;  %v996_v54 = vsel %vm985_vm4, %v951_v31, %v970_v53 }
 0x202   : > { %1214 = vmatprep.mubr.bf16.mxu1 %v1009_v57 }
 0x204   : > { %v972_v58 = vpop.permute.xlu0 %971  ;;  %v984_v59 = vpop.permute.xlu1 %983 }
 0x205   : > { %v1012_v30 = vsel %vm892_vm3, %v972_v58, %v984_v59  ;;  %v1000_v60 = vsel %vm985_vm4, %v952_v43, %v972_v58 }
 0x209   : > { %1215 = vmatmul.mubr.bf16.gmra.mxu1 %v996_v54 }
 0x20a   : > { %1222 = vmatprep.mubr.bf16.mxu1 %v1012_v30 }
 0x211   : > { %1223 = vmatmul.mubr.bf16.gmra.mxu1 %v1000_v60 }
 0x212   : > { %2017 = vmatprep.mubr.msk.bf16.mxu1 %vm883_vm2, %v978_v46 }
 0x219   : > { %2018 = vmatmul.mubr.msk.bf16.vlgmr.msra.gmra.mxu1 %vm883_vm2, %v980_v51 }
 0x21a   : > { %2021 = vmatprep.mubr.msk.bf16.mxu1 %vm883_vm2, %v982_v55 }
 0x221   : > { %2022 = vmatmul.mubr.msk.bf16.gmra.mxu1 %vm883_vm2, %v984_v59 }
 0x222   : > { %2053 = vmatprep.mubr.msk.f32.mxu1 %vm2264_vm5, %v2263_v42 }
 0x2b9   : > { %v1905_v63 = vpop.f32.mrf.mxu1 }
 0x2bb   : > { %v1906_v0 = vpop.f32.mrf.mxu1 }
 0x2bc   : > { %v1907_v28 = vadd.f32 %v1906_v0, %v1905_v63 }
 0x2bd   : > { %v1908_v1 = vpop.f32.mrf.mxu1 }
 0x2bf   : > { %v1909_v3 = vpop.f32.mrf.mxu1 }
 0x2c0   : > { %v1910_v5 = vadd.f32 %v1909_v3, %v1908_v1 }
 0x2c1   : > { %v1911_v36 = vpop.f32.mrf.mxu1 }
 0x2c3   : > { %v1912_v7 = vpop.f32.mrf.mxu1 }
 0x2c4   : > { %v1913_v16 = vadd.f32 %v1912_v7, %v1911_v36 }
 0x2c5   : > { %v1914_v8 = vpop.f32.mrf.mxu1 }
 0x2c7   : > { %v1915_v9 = vpop.f32.mrf.mxu1 }
 0x2c8   : > { %v1916_v32 = vadd.f32 %v1915_v9, %v1914_v8 }
 0x2c9   : > { %v1917_v10 = vpop.f32.mrf.mxu1 }
 0x2cb   : > { %v1918_v12 = vpop.f32.mrf.mxu1 }
 0x2cc   : > { %v1919_v45 = vadd.f32 %v1918_v12, %v1917_v10 }
 0x2cd   : > { %v1920_v33 = vpop.f32.mrf.mxu1 }
 0x2cf   : > { %v1921_v2 = vpop.f32.mrf.mxu1 }
 0x2d0   : > { %v1922_v57 = vadd.f32 %v1921_v2, %v1920_v33 }
 0x2d1   : > { %v1923_v13 = vpop.f32.mrf.mxu1 }
 0x2d3   : > { %v1924_v4 = vpop.f32.mrf.mxu1 }
 0x2d4   : > { %v1925_v24 = vadd.f32 %v1924_v4, %v1923_v13 }
 0x2d5   : > { %v1926_v14 = vpop.f32.mrf.mxu1 }
 0x2d7   : > { %v1927_v15 = vpop.f32.mrf.mxu1 }
 0x2d8   : > { %v1928_v53 = vadd.f32 %v1927_v15, %v1926_v14  ;;  %v1549_v15 = vld [vmem:[%s2937_s10 + $0x78] sm:$0xff] }
 0x2d9   : > { %v2019_v11 = vpop.f32.mrf.mxu1 }
 0x2da   : > { %v1274_v29 = vadd.f32 %v2019_v11, %v1913_v16  ;;  %v1548_v16 = vld [vmem:[%s2937_s10 + $0x70] sm:$0xff]  ;;  %v1547_v11 = vld [vmem:[%s2937_s10 + $0x68] sm:$0xff] }
 0x2db   : > { %v1265_v31 = vpop.f32.mrf.mxu1 }
 0x2dc   : > { %v1266_v35 = vadd.f32 %v1907_v28, %v1265_v31  ;;  %v1305_v39 = vmul.f32 %v1845_v34, %v1274_v29  ;;  %v1546_v28 = vld [vmem:[%s2937_s10 + $0x60] sm:$0xff]  ;;  %v1545_v29 = vld [vmem:[%s2937_s10 + $0x58] sm:$0xff]  ;;  %v1544_v31 = vld [vmem:[%s2937_s10 + $0x50] sm:$0xff] }
 0x2dd   : > { %v2020_v37 = vpop.f32.mrf.mxu1 }
 0x2de   : > { %v1303_v6 = vmul.f32 %v1845_v34, %v1266_v35  ;;  %v1277_v38 = vadd.f32 %v2020_v37, %v1916_v32  ;;  %v1320_v48 = vadd.f32 %v1846_v41, %v1305_v39  ;;  %v1543_v32 = vld [vmem:[%s2937_s10 + $0x48] sm:$0xff]  ;;  %v1541_v35 = vld [vmem:[%s2937_s10 + $0x38] sm:$0xff]  ;;  %v1540_v37 = vld [vmem:[%s2937_s10 + $0x30] sm:$0xff] }
 0x2df   : > { %v1268_v40 = vpop.f32.mrf.mxu1  ;;  %v1536_v39 = vld [vmem:[%s2937_s10 + $0x10] sm:$0xff] }
 0x2e0   : > { %v1306_v43 = vmul.f32 %v1845_v34, %v1277_v38  ;;  %v1269_v44 = vadd.f32 %v1910_v5, %v1268_v40  ;;  %v1318_v26 = vadd.f32 %v1846_v41, %v1303_v6  ;;  %v1328_v30 = vmax.f32 %v1320_v48, 0.0  ;;  %v1539_v5 = vld [vmem:[%s2937_s10 + $0x28] sm:$0xff]  ;;  %v1538_v6 = vld [vmem:[%s2937_s10 + $0x20] sm:$0xff]  ;;  %v1537_v38 = vld [vmem:[%s2937_s10 + $0x18] sm:$0xff] }
 0x2e1   : > { %v2023_v27 = vpop.f32.mrf.mxu1  ;;  %v1535_v40 = vld [vmem:[%s2937_s10 + $0x8] sm:$0xff] }
 0x2e2   : > { %v1321_v46 = vadd.f32 %v1846_v41, %v1306_v43  ;;  %v1304_v47 = vmul.f32 %v1845_v34, %v1269_v44  ;;  %v1290_v49 = vadd.f32 %v2023_v27, %v1925_v24  ;;  %v1326_v58 = vmax.f32 %v1318_v26, 0.0  ;;  %v1853_v26 = vld [vmem:[%s2935_s8] ss:$0 sm:$0xff] }
 0x2e3   : > { %v1281_v50 = vpop.f32.mrf.mxu1 }
 0x2e4   : > { %v1319_v51 = vadd.f32 %v1846_v41, %v1304_v47  ;;  %v1282_v52 = vadd.f32 %v1919_v45, %v1281_v50  ;;  %v1329_v55 = vmax.f32 %v1321_v46, 0.0  ;;  %v1309_v60 = vmul.f32 %v1845_v34, %v1290_v49  ;;  %v1854_v49 = vld [vmem:[%s2936_s9] ss:$0 sm:$0xff] }
 0x2e5   : > { %v2024_v56 = vpop.f32.mrf.mxu1 }
 0x2e6   : > { %v1327_v59 = vmax.f32 %v1319_v51, 0.0  ;;  %v1307_v54 = vmul.f32 %v1845_v34, %v1282_v52  ;;  %v1293_v62 = vadd.f32 %v2024_v56, %v1928_v53  ;;  %v1335_v1 = vpack.c.bf16 %v1329_v55, %v1328_v30 }
 0x2e7   : > { %v1284_v61 = vpop.f32.mrf.mxu1  ;;  %v1324_v8 = vadd.f32 %v1846_v41, %v1309_v60 }
 0x2e8   : > { %v1334_v63 = vpack.c.bf16 %v1327_v59, %v1326_v58  ;;  %v1285_v0 = vadd.f32 %v1922_v57, %v1284_v61  ;;  %v1310_v3 = vmul.f32 %v1845_v34, %v1293_v62  ;;  %v1322_v36 = vadd.f32 %v1846_v41, %v1307_v54 }
 0x2e9   : > { %v1332_v13 = vmax.f32 %v1324_v8, 0.0 }
 0x2ea   : > { %v1308_v7 = vmul.f32 %v1845_v34, %v1285_v0  ;;  %2029 = vmatprep.mubr.msk.bf16.mxu0 %vm883_vm2, %v1334_v63  ;;  %v1325_v9 = vadd.f32 %v1846_v41, %v1310_v3  ;;  %v1330_v33 = vmax.f32 %v1322_v36, 0.0  ;;  %v1542_v34 = vld [vmem:[%s2937_s10 + $0x40] sm:$0xff]  ;;  %v2265_v0 = vmov 0.015625  }
 0x2eb   : > { %2030 = vmatmul.mubr.msk.bf16.vlgmr.msra.gmra.mxu0 %vm883_vm2, %v1335_v1  ;;  %v1534_v1 = vld [vmem:[%s2937_s10] sm:$0xff] }
 0x2ec   : > { %v1323_v10 = vadd.f32 %v1846_v41, %v1308_v7  ;;  %v1333_v12 = vmax.f32 %v1325_v9, 0.0  ;;  %2057 = vmatpush3.msra.mxu0 %v1549_v15  ;;  %v1621_v7 = vld [vmem:[%s2938_s11] sm:$0xff] }
 0x2ed   : > { %2058 = vmatprep.subr.mxu0 %v2263_v42 }
 0x2ee   : > { %v1331_v2 = vmax.f32 %v1323_v10, 0.0  ;;  %v1337_v14 = vpack.c.bf16 %v1333_v12, %v1332_v13  ;;  %2059 = vmatpush3.msra.mxu0 %v1548_v16 }
 0x2ef   : > { %2060 = vmatprep.subr.mxu0 %v2263_v42 }
 0x2f0   : > { %v1336_v4 = vpack.c.bf16 %v1331_v2, %v1330_v33  ;;  %2061 = vmatpush3.msra.mxu0 %v1547_v11 }
 0x2f1   : > { %2062 = vmatprep.subr.mxu0 %v2263_v42 }
 0x2f2   : > { %2033 = vmatprep.mubr.msk.bf16.mxu0 %vm883_vm2, %v1336_v4  ;;  %2063 = vmatpush3.msra.mxu0 %v1546_v28  ;;  %v1704_v4 = vsub.s32 0, %v2466_v25 }
 0x2f3   : > { %2034 = vmatmul.mubr.msk.bf16.gmra.mxu0 %vm883_vm2, %v1337_v14  ;;  %2064 = vmatprep.subr.mxu0 %v2263_v42 }
 0x2f4   : > { %2088 = vmatprep.mubr.msk.f32.mxu0 %vm2264_vm5, %v2263_v42  ;;  %2065 = vmatpush3.msra.mxu0 %v1545_v29 }
 0x2f5   : > { %2066 = vmatprep.subr.mxu0 %v2263_v42 }
 0x2f6   : > { %2067 = vmatpush3.msra.mxu0 %v1544_v31 }
 0x2f7   : > { %2068 = vmatprep.subr.mxu0 %v2263_v42 }
 0x2f8   : > { %2069 = vmatpush3.msra.mxu0 %v1543_v32 }
 0x2f9   : > { %2070 = vmatprep.subr.mxu0 %v2263_v42 }
 0x2fa   : > { %2071 = vmatpush3.msra.mxu0 %v1542_v34 }
 0x2fb   : > { %2072 = vmatprep.subr.mxu0 %v2263_v42 }
 0x2fc   : > { %2073 = vmatpush3.msra.mxu0 %v1541_v35 }
 0x2fd   : > { %2074 = vmatprep.subr.mxu0 %v2263_v42 }
 0x2fe   : > { %2075 = vmatpush3.msra.mxu0 %v1540_v37  ;;  %v2197_v37 = vld [vmem:[%s2399_s17] sm:$0xff] }
 0x2ff   : > { %2076 = vmatprep.subr.mxu0 %v2263_v42 }
 0x300   : > { %2077 = vmatpush3.msra.mxu0 %v1539_v5 }
 0x301   : > { %2078 = vmatprep.subr.mxu0 %v2263_v42 }
 0x302   : > { %2079 = vmatpush3.msra.mxu0 %v1538_v6 }
 0x303   : > { %2080 = vmatprep.subr.mxu0 %v2263_v42 }
 0x304   : > { %2081 = vmatpush3.msra.mxu0 %v1537_v38 }
 0x305   : > { %2082 = vmatprep.subr.mxu0 %v2263_v42 }
 0x306   : > { %2083 = vmatpush3.msra.mxu0 %v1536_v39 }
 0x307   : > { %2084 = vmatprep.subr.mxu0 %v2263_v42 }
 0x308   : > { %2085 = vmatpush3.msra.mxu0 %v1535_v40 }
 0x309   : > { %2086 = vmatprep.subr.mxu0 %v2263_v42 }
 0x30a   : > { %2087 = vmatpush3.msra.mxu0 %v1534_v1 }
 0x3ab   : > { %v2031_v41 = vpop.f32.mrf.mxu0 }
 0x3ac   : > { %v1440_v58 = vmul.f32 %v2031_v41, %v1853_v26 }
 0x3ad   : > { %v1400_v43 = vpop.f32.mrf.mxu0 }
 0x3ae   : > { %v1455_v60 = vadd.f32 %v1854_v49, %v1440_v58  ;;  %v1438_v62 = vmul.f32 %v1853_v26, %v1400_v43 }
 0x3af   : > { %v2032_v44 = vpop.f32.mrf.mxu0 }
 0x3b0   : > { %v1441_v56 = vmul.f32 %v2032_v44, %v1853_v26  ;;  %v1453_v63 = vadd.f32 %v1854_v49, %v1438_v62 }
 0x3b1   : > { %v1403_v24 = vpop.f32.mrf.mxu0 }
 0x3b2   : > { %v1456_v54 = vadd.f32 %v1854_v49, %v1441_v56  ;;  %v1439_v30 = vmul.f32 %v1853_v26, %v1403_v24 }
 0x3b3   : > { %v2035_v27 = vpop.f32.mrf.mxu0 }
 0x3b4   : > { %v1444_v47 = vmul.f32 %v2035_v27, %v1853_v26  ;;  %v1454_v61 = vadd.f32 %v1854_v49, %v1439_v30 }
 0x3b5   : > { %v1416_v45 = vpop.f32.mrf.mxu0 }
 0x3b6   : > { %v1459_v53 = vadd.f32 %v1854_v49, %v1444_v47  ;;  %v1442_v55 = vmul.f32 %v1853_v26, %v1416_v45 }
 0x3b7   : > { %v2036_v46 = vpop.f32.mrf.mxu0 }
 0x3b8   : > { %v1445_v48 = vmul.f32 %v2036_v46, %v1853_v26  ;;  %v1457_v59 = vadd.f32 %v1854_v49, %v1442_v55 }
 0x3b9   : > { %v1419_v50 = vpop.f32.mrf.mxu0 }
 0x3ba   : > { %v2844_v51 = vadd.f32 %v1854_v49, %v1445_v48  ;;  %v1443_v52 = vmul.f32 %v1853_v26, %v1419_v50 }
 0x3bc   : > { %2038 = vmatpush3.msra.mxu1 %v2844_v51  ;;  %v1458_v57 = vadd.f32 %v1854_v49, %v1443_v52 }
 0x3bd   : > { %2039 = vmatprep.subr.mxu1 %v2263_v42 }
 0x3be   : > { %2040 = vmatpush3.msra.mxu1 %v1459_v53 }
 0x3bf   : > { %2041 = vmatprep.subr.mxu1 %v2263_v42 }
 0x3c0   : > { %2042 = vmatpush3.msra.mxu1 %v1458_v57 }
 0x3c1   : > { %2043 = vmatprep.subr.mxu1 %v2263_v42 }
 0x3c2   : > { %2044 = vmatpush3.msra.mxu1 %v1457_v59 }
 0x3c3   : > { %2045 = vmatprep.subr.mxu1 %v2263_v42 }
 0x3c4   : > { %2046 = vmatpush3.msra.mxu1 %v1456_v54 }
 0x3c5   : > { %2047 = vmatprep.subr.mxu1 %v2263_v42 }
 0x3c6   : > { %2048 = vmatpush3.msra.mxu1 %v1455_v60 }
 0x3c7   : > { %2049 = vmatprep.subr.mxu1 %v2263_v42 }
 0x3c8   : > { %2050 = vmatpush3.msra.mxu1 %v1454_v61 }
 0x3c9   : > { %2051 = vmatprep.subr.mxu1 %v2263_v42 }
 0x3ca   : > { %2052 = vmatpush3.msra.mxu1 %v1453_v63 }
 0x3cb   : > { %2054 = vmatmul.mubr.msk.f32.vlgmr.msra.gmra.mxu1 %vm892_vm3, %v2265_v0  ;;  %2091 = vmatprep.subr.mxu1 %v2263_v42 }
 0x3cc   : > { %2093 = vmatprep.mubr.msk.f32.mxu1 %vm2264_vm5, %v2263_v42  ;;  %2092 = vmatpush3.msra.mxu1 %v1621_v7 }
 0x48b   : > { %v1530_v3 = vpop.f32.mrf.mxu1 }
 0x48c   : > { %2089 = vmatmul.mubr.f32.vlgmr.msra.gmra.mxu0 %v1530_v3 }
 0x48d   : > { %v2055_v36 = vpop.f32.mrf.mxu1 }
 0x54c   : > { %v1616_v8 = vpop.f32.mrf.mxu0 }
 0x54d   : > { %v1620_v9 = vmax.f32 %v1616_v8, 0.0 }
 0x54e   : > { %v2090_v10 = vpop.f32.mrf.mxu0 }
 0x54f   : > { %2094 = vmatmul.mubr.msk.f32.vlgmr.msra.gmra.mxu1 %vm1622_vm6, %v1620_v9 }
 0x60f   : > { %v1692_v42 = vpop.f32.mrf.mxu1 }
 0x610   : > { %v1857_v12 = vmul.f32 -1.442695, %v1692_v42 }
 0x611   : > { %v2095_v33 = vpop.f32.mrf.mxu1 }
 0x612   : > { %2193 = vpow2.f32 %v1857_v12 }
 0x61f   : > { %v2194_v2 = vpop.eup %2193 }
 0x620   : > { %v1699_v13 = vadd.f32 1.0, %v2194_v2 }
 0x622   : > { %2195 = vrcp.f32 %v1699_v13 }
 0x62f   : > { %v2196_v14 = vpop.eup %2195 }
 0x630   : > { %v1705_v15 = vrot.slane %v2196_v14, %v1704_v4 }
 0x632   : > { %v1706_v16 = vmul.f32 %v1705_v15, %v1453_v63  ;;  %v1707_v11 = vmul.f32 %v1705_v15, %v1454_v61  ;;  %v1708_v28 = vmul.f32 %v1705_v15, %v1455_v60  ;;  %v1709_v29 = vmul.f32 %v1705_v15, %v1456_v54 }
 0x633   : > { %v1710_v31 = vmul.f32 %v1705_v15, %v1457_v59  ;;  %v1711_v32 = vmul.f32 %v1705_v15, %v1458_v57  ;;  %v1712_v34 = vmul.f32 %v1705_v15, %v1459_v53  ;;  %v1713_v35 = vmul.f32 %v1705_v15, %v2844_v51 }
 0x634   : > { %v1714_v5 = vadd.f32 %v2197_v37, %v1706_v16  ;;  %v1715_v25 = vadd.f32 %v1707_v11, %v2439_v17  ;;  %v1716_v6 = vadd.f32 %v1708_v28, %v2442_v18  ;;  %v1717_v38 = vadd.f32 %v1709_v29, %v2447_v19 }
 0x635   : > { %v1718_v39 = vadd.f32 %v1710_v31, %v2450_v20  ;;  %v1719_v40 = vadd.f32 %v1711_v32, %v2455_v21  ;;  %v1720_v41 = vadd.f32 %v1712_v34, %v2458_v22  ;;  %v1721_v43 = vadd.f32 %v1713_v35, %v2463_v23 }
 0x636   : > { %v1722_v44 = vmax.f32 %v1714_v5, 0.0  ;;  %v1723_v24 = vmax.f32 %v1715_v25, 0.0  ;;  %v1724_v27 = vmax.f32 %v1716_v6, 0.0  ;;  %v1725_v45 = vmax.f32 %v1717_v38, 0.0 }
 0x637   : > { %v1726_v17 = vmax.f32 %v1718_v39, 0.0  ;;  %v1727_v18 = vmax.f32 %v1719_v40, 0.0  ;;  %v1728_v19 = vmax.f32 %v1720_v41, 0.0  ;;  %v1729_v20 = vmax.f32 %v1721_v43, 0.0 }
 0x638   : > { %1730 = vst [vmem:[%s406_s23] sm:$0xff] %v1722_v44  ;;  %1731 = vst [vmem:[%s406_s23 + $0x8] sm:$0xff] %v1723_v24 }
 0x639   : > { %1732 = vst [vmem:[%s406_s23 + $0x10] sm:$0xff] %v1724_v27  ;;  %1733 = vst [vmem:[%s406_s23 + $0x18] sm:$0xff] %v1725_v45 }
 0x63a   : > { %1734 = vst [vmem:[%s406_s23 + $0x20] sm:$0xff] %v1726_v17  ;;  %1735 = vst [vmem:[%s406_s23 + $0x28] sm:$0xff] %v1727_v18 }
 0x63b   : > { %1736 = vst [vmem:[%s406_s23 + $0x30] sm:$0xff] %v1728_v19  ;;  %1737 = vst [vmem:[%s406_s23 + $0x38] sm:$0xff] %v1729_v20 }
 0x63c   : > { %2211 = shalt.err (!%p2208_p3)
}
 0x63d   : > { %s2212_s28 = scalar_lea.hbm %s2881_s16, 1024  ;;  %s2216_s25 = scalar_lea.hbm %s2939_s12, 2048 }
 0x63e   : > { %p2213_p4 = scmp.ne.s32.totalorder %s2881_s16, %s2212_s28  ;;  %p2217_p9 = scmp.lt.s32.totalorder %s2881_s16, %s2939_s12 }
 0x63f   : > { %p2218_p10 = scmp.lt.s32.totalorder %s2216_s25, %s2212_s28 }
 0x640   : > { %p2214_p7 = pnand %p2213_p4, %p2372_p5 }
 0x641   : > { %p2219_p11 = por %p2218_p10, %p2217_p9 }
 0x642   : > { %p2215_p8 = pneg %p2214_p7 }
 0x644   : > { %p2220_p12 = pnand %p2219_p11, %p2215_p8 }
 0x646   : > { %2223 = shalt.err (!%p2220_p12)
}
 0x647   : > { %s2267_s19 = smov 128   ;;  %s2268_s26 = smov 8  }
 0x648   : > { %2096 = dma.vmem_to_hbm [thread:$0]  (%p2372_p5), %s2883_s15, 1024, %s2881_s16, %s2887_s18, %s2267_s19, %s2267_s19, %s2268_s26  }
 0x649 PF: > { %p2102_p13 = scmp.ge.s32.totalorder %s2258_s24, 2  ;;  %s1767_s30 = sand.u32 1, %s2246_s21  }
 0x64a   : > { %s1768_s28 = scalar_lea.sflag [#allocation3], %s1767_s30 }
 0x64b   : > { %p2099_p0 = pnand %p2102_p13, %p2376_p6 }
 0x64d   : > { %p2100_p1 = pneg %p2099_p0 }
 0x64f   : > { %2241 = dma.done.wait (%p2100_p1), %s1768_s28, 1024  }
 0x650   : > { %2243 = vsyncadd (%p2100_p1), %s1768_s28, 4294966272  ;;  %s2980_s29 = sld [smem:[#allocation5_spill]]  ;;  %p22_p2 = scmp.ge.s32.totalorder %s2359_s27, 4  }
 0x651   : > { %s2981_s23 = sld [smem:[#allocation6_spill]]  ;;  %s2982_s21 = smov %s2250_s22 }
 0x652   : > { %s2984_s24 = smov %s2359_s27  ;;  %24 = sbr.rel (!%p22_p2) target bundleno = 3 (0x3), region = 103 }
 0x656   : > { %s2983_s22 = smov %s2980_s29 }
 0x657   :  { %1773 = vsyncpa [#allocation3], 1 }
 0x658   :  { %1775 = vsyncpa [#allocation3 + $0x1], 1 }

</bundles_post_ra>
